<compile_context>
chip_gen: v6e
topology: v6e:2x2x1
jax: 0.10.0
libtpu: 0.0.40
codegen_flags: <defaults>
</compile_context>

<pallas_src>
import math

import jax
import jax.numpy as jnp
from jax.experimental import pallas as pl
from jax.experimental.pallas import tpu as pltpu


# ------------------------------ kernel factory ------------------------------

def make_decoder_block_kernel(B, S, D, H, A, FF):
    HA = H * A
    assert HA == D, "module requires h * att_dim == inp_dim"

    def layer_norm(x, gamma, beta, eps=1e-5):
        mu = jnp.mean(x, axis=-1, keepdims=True)
        xc = x - mu
        var = jnp.mean(xc * xc, axis=-1, keepdims=True)
        return xc * jax.lax.rsqrt(var + eps) * gamma + beta

    def attention(q, k, v, Wo, bo, masked):
        """q, k, v: (B*S, H*A) f32 with 1/sqrt(A) already folded into q."""
        # One (S, S) score block per (batch, head), stacked along sublanes so
        # the causal mask and softmax run ONCE over all B*H blocks.
        blocks = []
        for b in range(B):
            r0 = b * S
            for h in range(H):
                c0 = h * A
                blocks.append(jax.lax.dot_general(
                    q[r0:r0 + S, c0:c0 + A], k[r0:r0 + S, c0:c0 + A],
                    (((1,), (1,)), ((), ())),          # NT contraction
                    preferred_element_type=jnp.float32))
        s = blocks[0] if len(blocks) == 1 else jnp.concatenate(blocks, axis=0)
        if masked:
            row = jax.lax.broadcasted_iota(jnp.int32, s.shape, 0) % S
            col = jax.lax.broadcasted_iota(jnp.int32, s.shape, 1)
            s = jnp.where(col > row, -1e30, s)         # NaN-safe "-inf"
        m = jnp.max(s, axis=-1, keepdims=True)
        e = jnp.exp(s - m)
        p = e / jnp.sum(e, axis=-1, keepdims=True)     # (B*H*S, S)

        # Per-head PV matmuls; heads concatenated along lanes, then a single
        # (B*S, H*A) x (H*A, D) output-projection matmul.
        rows = []
        for b in range(B):
            r0 = b * S
            heads = []
            for h in range(H):
                i = b * H + h
                heads.append(jnp.dot(
                    p[i * S:(i + 1) * S, :],
                    v[r0:r0 + S, h * A:(h + 1) * A],
                    preferred_element_type=jnp.float32))       # (S, A)
            rows.append(jnp.concatenate(heads, axis=1))        # (S, H*A)
        cat = rows[0] if B == 1 else jnp.concatenate(rows, axis=0)
        return jnp.dot(cat, Wo, preferred_element_type=jnp.float32) + bo

    def kernel(enc_ref, tgt_ref, w_ref, bias_ref, ffn_ref, out_ref):
        enc = enc_ref[...]                       # (B*S, D)
        tgt = tgt_ref[...]                       # (B*S, D)
        W = w_ref[...]                           # (D, 8*D) packed attn weights
        Bv = bias_ref[...]                       # (9, D)  packed biases / LN
        bo_m, g1, b1 = Bv[0:1, :], Bv[1:2, :], Bv[2:3, :]
        bo_c, g2, b2 = Bv[3:4, :], Bv[4:5, :], Bv[5:6, :]
        bb2, g3, b3 = Bv[6:7, :], Bv[7:8, :], Bv[8:9, :]

        # 1) masked self-attention (Q, K, V all from target): fused QKV proj.
        qkv = jnp.dot(tgt, W[:, 0:3 * D], preferred_element_type=jnp.float32)
        y_att = attention(qkv[:, 0:D], qkv[:, D:2 * D], qkv[:, 2 * D:3 * D],
                          W[:, 3 * D:4 * D], bo_m, masked=True)
        y = layer_norm(tgt + y_att, g1, b1)

        # 2) cross attention: Q, K from encoder_z (fused), V from y.
        qk = jnp.dot(enc, W[:, 4 * D:6 * D], preferred_element_type=jnp.float32)
        vproj = jnp.dot(y, W[:, 6 * D:7 * D], preferred_element_type=jnp.float32)
        z_att = attention(qk[:, 0:D], qk[:, D:2 * D], vproj,
                          W[:, 7 * D:8 * D], bo_c, masked=False)
        z = layer_norm(y + z_att, g2, b2)

        # 3) feed-forward: Linear(D, FF) -> ReLU -> Linear(FF, D).
        W1 = ffn_ref[0:D, :]                     # (D, FF)
        W2T = ffn_ref[D:2 * D, :]                # (D, FF) == w2^T
        bb1 = ffn_ref[2 * D:2 * D + 1, :]        # (1, FF)
        hid = jnp.maximum(
            jnp.dot(z, W1, preferred_element_type=jnp.float32) + bb1, 0.0)
        ff = jax.lax.dot_general(hid, W2T, (((1,), (1,)), ((), ())),
                                 preferred_element_type=jnp.float32) + bb2

        out_ref[...] = layer_norm(z + ff, g3, b3)

    return kernel


# ------------------------------ param packing -------------------------------

def pack_params(params, H, A, D):
    """Pack the 18 module parameters into 3 slabs (fewer, bigger DMAs)."""
    inv_scale = 1.0 / math.sqrt(A)

    def heads_to_cols(w):                        # (H, D, A) -> (D, H*A)
        Hh, Dd, Aa = w.shape
        return jnp.transpose(w, (1, 0, 2)).reshape(Dd, Hh * Aa)

    # Attention weight slab: (D, 8*D).  1/sqrt(A) folded into Wq columns.
    wslab = jnp.concatenate([
        heads_to_cols(params["wq_m"]) * inv_scale,
        heads_to_cols(params["wk_m"]),
        heads_to_cols(params["wv_m"]),
        params["wo_m"],
        heads_to_cols(params["wq_c"]) * inv_scale,
        heads_to_cols(params["wk_c"]),
        heads_to_cols(params["wv_c"]),
        params["wo_c"],
    ], axis=1).astype(jnp.float32)

    # Bias / LayerNorm slab: (9, D).
    bias_slab = jnp.concatenate([
        params["bo_m"], params["g1"], params["b1"],
        params["bo_c"], params["g2"], params["b2"],
        params["bb2"], params["g3"], params["b3"],
    ], axis=0).astype(jnp.float32)

    # FFN slab: [w1 | w2^T | bb1] -> (2*D + 1, FF); all slice starts 8-aligned.
    ffn_slab = jnp.concatenate([
        params["w1"], params["w2"].T, params["bb1"],
    ], axis=0).astype(jnp.float32)

    return wslab, bias_slab, ffn_slab


# ------------------------------- host wrapper --------------------------------

def decoder_block(encoder_z, target_seq, params, h):
    B, S, D = encoder_z.shape
    A = params["wq_m"].shape[2]
    FF = params["w1"].shape[1]

    wslab, bias_slab, ffn_slab = pack_params(params, h, A, D)
    enc2 = encoder_z.reshape(B * S, D).astype(jnp.float32)   # flatten wrapper-side
    tgt2 = target_seq.reshape(B * S, D).astype(jnp.float32)

    kernel = make_decoder_block_kernel(B, S, D, h, A, FF)

    def full_spec(shape):
        nd = len(shape)
        return pl.BlockSpec(shape, lambda i, _n=nd: (0,) * _n)

    args = (enc2, tgt2, wslab, bias_slab, ffn_slab)
    out = pl.pallas_call(
        kernel,
        out_shape=jax.ShapeDtypeStruct((B * S, D), jnp.float32),
        grid=(1,),                                   # whole batch in one step
        in_specs=[full_spec(a.shape) for a in args],
        out_specs=full_spec((B * S, D)),
        compiler_params=pltpu.CompilerParams(
            dimension_semantics=("arbitrary",)),
    )(*args)
    return out.reshape(B, S, D)


# --------------------------- f32 ground-truth ref ----------------------------

def reference_decoder_block(encoder_z, target_seq, p):
    """Pure f32 mirror of the PyTorch module (precision=HIGHEST matmuls)."""
    hp = jax.lax.Precision.HIGHEST

    def mm(a, b):
        return jnp.matmul(a, b, precision=hp)

    def ln(x, g, b, eps=1e-5):
        mu = x.mean(-1, keepdims=True)
        var = ((x - mu) ** 2).mean(-1, keepdims=True)
        return (x - mu) / jnp.sqrt(var + eps) * g + b

    def mha(x, outputs, Wq, Wk, Wv, Wo, bo, masked):
        _, S, _ = x.shape
        H, _, A = Wq.shape
        heads = []
        for i in range(H):
            q = mm(x, Wq[i])
            k = mm(x, Wk[i])
            vsrc = x if outputs is None else outputs
            v = mm(vsrc, Wv[i])
            scores = mm(q, jnp.swapaxes(k, 1, 2))
            if masked:
                mask = jnp.triu(jnp.full((S, S), -jnp.inf, jnp.float32), k=1)
                scores = scores + mask
            scores = scores / (A ** 0.5)
            attn = jax.nn.softmax(scores, axis=-1)
            heads.append(mm(attn, v))
        cat = jnp.concatenate(heads, axis=-1)
        return mm(cat, Wo) + bo

    y = mha(target_seq, None, p["wq_m"], p["wk_m"], p["wv_m"],
            p["wo_m"], p["bo_m"], masked=True)
    y = ln(target_seq + y, p["g1"], p["b1"])
    z = mha(encoder_z, y, p["wq_c"], p["wk_c"], p["wv_c"],
            p["wo_c"], p["bo_c"], masked=False)
    z = ln(y + z, p["g2"], p["b2"])
    hid = jnp.maximum(mm(z, p["w1"]) + p["bb1"], 0.0)
    f = mm(hid, p["w2"]) + p["bb2"]
    return ln(z + f, p["g3"], p["b3"])


# ---------------------------------- driver -----------------------------------

if __name__ == "__main__":
    B, S, D, H = 2, 8, 32, 4
    A = D // H          # per-head attention dim; h * att_dim == inp_dim
    FF = 2048           # FFN hidden width from the module definition

    key = jax.random.PRNGKey(0)
    keys = jax.random.split(key, 24)
    nrm = lambda k, shape, scale=0.1: (scale * jax.random.normal(k, shape)).astype(jnp.float32)

    params = {
        # masked multi-head self-attention
        "wq_m": nrm(keys[0], (H, D, A)),
        "wk_m": nrm(keys[1], (H, D, A)),
        "wv_m": nrm(keys[2], (H, D, A)),
        "wo_m": nrm(keys[3], (D, D)),
        "bo_m": nrm(keys[4], (1, D)),
        "g1": (1.0 + nrm(keys[5], (1, D))),
        "b1": nrm(keys[6], (1, D)),
        # cross multi-head attention
        "wq_c": nrm(keys[7], (H, D, A)),
        "wk_c": nrm(keys[8], (H, D, A)),
        "wv_c": nrm(keys[9], (H, D, A)),
        "wo_c": nrm(keys[10], (D, D)),
        "bo_c": nrm(keys[11], (1, D)),
        "g2": (1.0 + nrm(keys[12], (1, D))),
        "b2": nrm(keys[13], (1, D)),
        # feed-forward network
        "w1": nrm(keys[14], (D, FF)),
        "bb1": nrm(keys[15], (1, FF)),
        "w2": nrm(keys[16], (FF, D)),
        "bb2": nrm(keys[17], (1, D)),
        # final layer norm
        "g3": (1.0 + nrm(keys[18], (1, D))),
        "b3": nrm(keys[19], (1, D)),
    }

    encoder_z = jax.random.normal(keys[20], (B, S, D), jnp.float32)
    target_seq = jax.random.normal(keys[21], (B, S, D), jnp.float32)

    out = decoder_block(encoder_z, target_seq, params, h=H)
    out = jax.block_until_ready(out)

    ref = reference_decoder_block(encoder_z, target_seq, params)
    ref = jax.block_until_ready(ref)

    assert out.shape == (B, S, D)
    max_err = float(jnp.max(jnp.abs(out - ref)))
    # Kernel math is f32; typical error vs. the HIGHEST-precision f32 reference
    # is ~1e-5.  The tolerance leaves headroom for backends whose default f32
    # matmul path uses bf16 operand passes (documented TPU behavior).
    assert jnp.allclose(out, ref, rtol=3e-2, atol=3e-2), f"max abs err {max_err}"

    print("KERNEL_OK")
</pallas_src>

<mosaic_0001>
module attributes {stable_mosaic.version = 11 : i64} {
  func.func @kernel(%arg0: i32, %arg1: memref<16x32xf32, #tpu.memory_space<vmem>>, %arg2: memref<16x32xf32, #tpu.memory_space<vmem>>, %arg3: memref<32x256xf32, #tpu.memory_space<vmem>>, %arg4: memref<9x32xf32, #tpu.memory_space<vmem>>, %arg5: memref<65x2048xf32, #tpu.memory_space<vmem>>, %arg6: memref<16x32xf32, #tpu.memory_space<vmem>>) attributes {dimension_semantics = [#tpu.dimension_semantics<arbitrary>], iteration_bounds = array<i64: 1>, scalar_prefetch = 0 : i64, scratch_operands = 0 : i64, tpu.core_type = #tpu.core_type<tc>, window_params = [{pipeline_mode = #tpu.pipeline_mode<synchronous>, transform_indices = @transform_0, window_bounds = array<i64: 16, 32>}, {pipeline_mode = #tpu.pipeline_mode<synchronous>, transform_indices = @transform_1, window_bounds = array<i64: 16, 32>}, {pipeline_mode = #tpu.pipeline_mode<synchronous>, transform_indices = @transform_2, window_bounds = array<i64: 32, 256>}, {pipeline_mode = #tpu.pipeline_mode<synchronous>, transform_indices = @transform_3, window_bounds = array<i64: 9, 32>}, {pipeline_mode = #tpu.pipeline_mode<synchronous>, transform_indices = @transform_4, window_bounds = array<i64: 65, 2048>}, {pipeline_mode = #tpu.pipeline_mode<synchronous>, transform_indices = @transform_5, window_bounds = array<i64: 16, 32>}]} {
    %c0 = arith.constant 0 : index
    %c0_0 = arith.constant 0 : index
    %0 = vector.load %arg1[%c0, %c0_0] : memref<16x32xf32, #tpu.memory_space<vmem>>, vector<16x32xf32>
    %c0_1 = arith.constant 0 : index
    %c0_2 = arith.constant 0 : index
    %1 = vector.load %arg2[%c0_1, %c0_2] : memref<16x32xf32, #tpu.memory_space<vmem>>, vector<16x32xf32>
    %c0_3 = arith.constant 0 : index
    %c0_4 = arith.constant 0 : index
    %2 = vector.load %arg3[%c0_3, %c0_4] : memref<32x256xf32, #tpu.memory_space<vmem>>, vector<32x256xf32>
    %c0_5 = arith.constant 0 : index
    %c0_6 = arith.constant 0 : index
    %3 = vector.load %arg4[%c0_5, %c0_6] : memref<9x32xf32, #tpu.memory_space<vmem>>, vector<9x32xf32>
    %4 = vector.extract_strided_slice %3 {offsets = [0, 0], sizes = [1, 32], strides = [1, 1]} : vector<9x32xf32> to vector<1x32xf32>
    %5 = vector.extract_strided_slice %3 {offsets = [1, 0], sizes = [1, 32], strides = [1, 1]} : vector<9x32xf32> to vector<1x32xf32>
    %6 = vector.extract_strided_slice %3 {offsets = [2, 0], sizes = [1, 32], strides = [1, 1]} : vector<9x32xf32> to vector<1x32xf32>
    %7 = vector.extract_strided_slice %3 {offsets = [3, 0], sizes = [1, 32], strides = [1, 1]} : vector<9x32xf32> to vector<1x32xf32>
    %8 = vector.extract_strided_slice %3 {offsets = [4, 0], sizes = [1, 32], strides = [1, 1]} : vector<9x32xf32> to vector<1x32xf32>
    %9 = vector.extract_strided_slice %3 {offsets = [5, 0], sizes = [1, 32], strides = [1, 1]} : vector<9x32xf32> to vector<1x32xf32>
    %10 = vector.extract_strided_slice %3 {offsets = [6, 0], sizes = [1, 32], strides = [1, 1]} : vector<9x32xf32> to vector<1x32xf32>
    %11 = vector.extract_strided_slice %3 {offsets = [7, 0], sizes = [1, 32], strides = [1, 1]} : vector<9x32xf32> to vector<1x32xf32>
    %12 = vector.extract_strided_slice %3 {offsets = [8, 0], sizes = [1, 32], strides = [1, 1]} : vector<9x32xf32> to vector<1x32xf32>
    %13 = vector.extract_strided_slice %2 {offsets = [0, 0], sizes = [32, 96], strides = [1, 1]} : vector<32x256xf32> to vector<32x96xf32>
    %cst = arith.constant dense<0.000000e+00> : vector<16x96xf32>
    %14 = tpu.matmul %1, %13, %cst {dimension_numbers = #tpu.dot_dimension_numbers<[1], [0], [0], [1], [0, 0, 1, 1], [], []>} : vector<16x32xf32>, vector<32x96xf32>, vector<16x96xf32> -> vector<16x96xf32>
    %15 = vector.extract_strided_slice %14 {offsets = [0, 0], sizes = [16, 32], strides = [1, 1]} : vector<16x96xf32> to vector<16x32xf32>
    %16 = vector.extract_strided_slice %14 {offsets = [0, 32], sizes = [16, 32], strides = [1, 1]} : vector<16x96xf32> to vector<16x32xf32>
    %17 = vector.extract_strided_slice %14 {offsets = [0, 64], sizes = [16, 32], strides = [1, 1]} : vector<16x96xf32> to vector<16x32xf32>
    %18 = vector.extract_strided_slice %2 {offsets = [0, 96], sizes = [32, 32], strides = [1, 1]} : vector<32x256xf32> to vector<32x32xf32>
    %19 = vector.extract_strided_slice %15 {offsets = [0, 0], sizes = [8, 8], strides = [1, 1]} : vector<16x32xf32> to vector<8x8xf32>
    %20 = vector.extract_strided_slice %16 {offsets = [0, 0], sizes = [8, 8], strides = [1, 1]} : vector<16x32xf32> to vector<8x8xf32>
    %cst_7 = arith.constant dense<0.000000e+00> : vector<8x8xf32>
    %21 = tpu.matmul %19, %20, %cst_7 {dimension_numbers = #tpu.dot_dimension_numbers<[1], [1], [0], [0], [0, 0, 1, 0], [], []>} : vector<8x8xf32>, vector<8x8xf32>, vector<8x8xf32> -> vector<8x8xf32>
    %22 = vector.extract_strided_slice %15 {offsets = [0, 8], sizes = [8, 8], strides = [1, 1]} : vector<16x32xf32> to vector<8x8xf32>
    %23 = vector.extract_strided_slice %16 {offsets = [0, 8], sizes = [8, 8], strides = [1, 1]} : vector<16x32xf32> to vector<8x8xf32>
    %cst_8 = arith.constant dense<0.000000e+00> : vector<8x8xf32>
    %24 = tpu.matmul %22, %23, %cst_8 {dimension_numbers = #tpu.dot_dimension_numbers<[1], [1], [0], [0], [0, 0, 1, 0], [], []>} : vector<8x8xf32>, vector<8x8xf32>, vector<8x8xf32> -> vector<8x8xf32>
    %25 = vector.extract_strided_slice %15 {offsets = [0, 16], sizes = [8, 8], strides = [1, 1]} : vector<16x32xf32> to vector<8x8xf32>
    %26 = vector.extract_strided_slice %16 {offsets = [0, 16], sizes = [8, 8], strides = [1, 1]} : vector<16x32xf32> to vector<8x8xf32>
    %cst_9 = arith.constant dense<0.000000e+00> : vector<8x8xf32>
    %27 = tpu.matmul %25, %26, %cst_9 {dimension_numbers = #tpu.dot_dimension_numbers<[1], [1], [0], [0], [0, 0, 1, 0], [], []>} : vector<8x8xf32>, vector<8x8xf32>, vector<8x8xf32> -> vector<8x8xf32>
    %28 = vector.extract_strided_slice %15 {offsets = [0, 24], sizes = [8, 8], strides = [1, 1]} : vector<16x32xf32> to vector<8x8xf32>
    %29 = vector.extract_strided_slice %16 {offsets = [0, 24], sizes = [8, 8], strides = [1, 1]} : vector<16x32xf32> to vector<8x8xf32>
    %cst_10 = arith.constant dense<0.000000e+00> : vector<8x8xf32>
    %30 = tpu.matmul %28, %29, %cst_10 {dimension_numbers = #tpu.dot_dimension_numbers<[1], [1], [0], [0], [0, 0, 1, 0], [], []>} : vector<8x8xf32>, vector<8x8xf32>, vector<8x8xf32> -> vector<8x8xf32>
    %31 = vector.extract_strided_slice %15 {offsets = [8, 0], sizes = [8, 8], strides = [1, 1]} : vector<16x32xf32> to vector<8x8xf32>
    %32 = vector.extract_strided_slice %16 {offsets = [8, 0], sizes = [8, 8], strides = [1, 1]} : vector<16x32xf32> to vector<8x8xf32>
    %cst_11 = arith.constant dense<0.000000e+00> : vector<8x8xf32>
    %33 = tpu.matmul %31, %32, %cst_11 {dimension_numbers = #tpu.dot_dimension_numbers<[1], [1], [0], [0], [0, 0, 1, 0], [], []>} : vector<8x8xf32>, vector<8x8xf32>, vector<8x8xf32> -> vector<8x8xf32>
    %34 = vector.extract_strided_slice %15 {offsets = [8, 8], sizes = [8, 8], strides = [1, 1]} : vector<16x32xf32> to vector<8x8xf32>
    %35 = vector.extract_strided_slice %16 {offsets = [8, 8], sizes = [8, 8], strides = [1, 1]} : vector<16x32xf32> to vector<8x8xf32>
    %cst_12 = arith.constant dense<0.000000e+00> : vector<8x8xf32>
    %36 = tpu.matmul %34, %35, %cst_12 {dimension_numbers = #tpu.dot_dimension_numbers<[1], [1], [0], [0], [0, 0, 1, 0], [], []>} : vector<8x8xf32>, vector<8x8xf32>, vector<8x8xf32> -> vector<8x8xf32>
    %37 = vector.extract_strided_slice %15 {offsets = [8, 16], sizes = [8, 8], strides = [1, 1]} : vector<16x32xf32> to vector<8x8xf32>
    %38 = vector.extract_strided_slice %16 {offsets = [8, 16], sizes = [8, 8], strides = [1, 1]} : vector<16x32xf32> to vector<8x8xf32>
    %cst_13 = arith.constant dense<0.000000e+00> : vector<8x8xf32>
    %39 = tpu.matmul %37, %38, %cst_13 {dimension_numbers = #tpu.dot_dimension_numbers<[1], [1], [0], [0], [0, 0, 1, 0], [], []>} : vector<8x8xf32>, vector<8x8xf32>, vector<8x8xf32> -> vector<8x8xf32>
    %40 = vector.extract_strided_slice %15 {offsets = [8, 24], sizes = [8, 8], strides = [1, 1]} : vector<16x32xf32> to vector<8x8xf32>
    %41 = vector.extract_strided_slice %16 {offsets = [8, 24], sizes = [8, 8], strides = [1, 1]} : vector<16x32xf32> to vector<8x8xf32>
    %cst_14 = arith.constant dense<0.000000e+00> : vector<8x8xf32>
    %42 = tpu.matmul %40, %41, %cst_14 {dimension_numbers = #tpu.dot_dimension_numbers<[1], [1], [0], [0], [0, 0, 1, 0], [], []>} : vector<8x8xf32>, vector<8x8xf32>, vector<8x8xf32> -> vector<8x8xf32>
    %43 = tpu.concatenate %21, %24, %27, %30, %33, %36, %39, %42 in 0 : vector<8x8xf32>, vector<8x8xf32>, vector<8x8xf32>, vector<8x8xf32>, vector<8x8xf32>, vector<8x8xf32>, vector<8x8xf32>, vector<8x8xf32> -> vector<64x8xf32>
    %44 = tpu.iota {dimensions = array<i32: 0>} : vector<64x8xi32>
    %c8_i32 = arith.constant 8 : i32
    %c0_i32 = arith.constant 0 : i32
    %45 = arith.cmpi eq, %c8_i32, %c0_i32 : i32
    %c1_i32 = arith.constant 1 : i32
    %46 = arith.select %45, %c1_i32, %c8_i32 : i32
    %47 = vector.broadcast %46 : i32 to vector<64x8xi32>
    %48 = arith.remsi %44, %47 : vector<64x8xi32>
    %c0_i32_15 = arith.constant 0 : i32
    %49 = vector.broadcast %c0_i32_15 : i32 to vector<64x8xi32>
    %50 = arith.cmpi ne, %48, %49 : vector<64x8xi32>
    %c0_i32_16 = arith.constant 0 : i32
    %51 = vector.broadcast %c0_i32_16 : i32 to vector<64x8xi32>
    %52 = arith.cmpi slt, %48, %51 : vector<64x8xi32>
    %c0_i32_17 = arith.constant 0 : i32
    %53 = arith.cmpi slt, %46, %c0_i32_17 : i32
    %54 = vector.broadcast %53 : i1 to vector<64x8xi1>
    %55 = vector.broadcast %54 : vector<64x8xi1> to vector<64x8xi1>
    %56 = arith.xori %52, %55 : vector<64x8xi1>
    %57 = arith.andi %56, %50 : vector<64x8xi1>
    %58 = vector.broadcast %46 : i32 to vector<64x8xi32>
    %59 = arith.addi %48, %58 : vector<64x8xi32>
    %60 = arith.select %57, %59, %48 : vector<64x8xi1>, vector<64x8xi32>
    %61 = tpu.iota {dimensions = array<i32: 1>} : vector<64x8xi32>
    %62 = arith.cmpi sgt, %61, %60 : vector<64x8xi32>
    %cst_18 = arith.constant -1.000000e+30 : f32
    %63 = vector.broadcast %cst_18 : f32 to vector<64x8xf32>
    %64 = arith.select %62, %63, %43 : vector<64x8xi1>, vector<64x8xf32>
    %cst_19 = arith.constant dense<0xFF800000> : vector<64xf32>
    %65 = vector.multi_reduction <maximumf>, %64, %cst_19 [1] : vector<64x8xf32> to vector<64xf32>
    %66 = vector.shape_cast %65 : vector<64xf32> to vector<64x1xf32>
    %67 = vector.broadcast %66 : vector<64x1xf32> to vector<64x8xf32>
    %68 = arith.subf %64, %67 : vector<64x8xf32>
    %69 = math.exp %68 : vector<64x8xf32>
    %cst_20 = arith.constant dense<0.000000e+00> : vector<64xf32>
    %70 = vector.multi_reduction <add>, %69, %cst_20 [1] : vector<64x8xf32> to vector<64xf32>
    %71 = vector.shape_cast %70 : vector<64xf32> to vector<64x1xf32>
    %72 = vector.broadcast %71 : vector<64x1xf32> to vector<64x8xf32>
    %73 = arith.divf %69, %72 : vector<64x8xf32>
    %74 = vector.extract_strided_slice %73 {offsets = [0, 0], sizes = [8, 8], strides = [1, 1]} : vector<64x8xf32> to vector<8x8xf32>
    %75 = vector.extract_strided_slice %17 {offsets = [0, 0], sizes = [8, 8], strides = [1, 1]} : vector<16x32xf32> to vector<8x8xf32>
    %cst_21 = arith.constant dense<0.000000e+00> : vector<8x8xf32>
    %76 = tpu.matmul %74, %75, %cst_21 {dimension_numbers = #tpu.dot_dimension_numbers<[1], [0], [0], [1], [0, 0, 1, 1], [], []>} : vector<8x8xf32>, vector<8x8xf32>, vector<8x8xf32> -> vector<8x8xf32>
    %77 = vector.extract_strided_slice %73 {offsets = [8, 0], sizes = [8, 8], strides = [1, 1]} : vector<64x8xf32> to vector<8x8xf32>
    %78 = vector.extract_strided_slice %17 {offsets = [0, 8], sizes = [8, 8], strides = [1, 1]} : vector<16x32xf32> to vector<8x8xf32>
    %cst_22 = arith.constant dense<0.000000e+00> : vector<8x8xf32>
    %79 = tpu.matmul %77, %78, %cst_22 {dimension_numbers = #tpu.dot_dimension_numbers<[1], [0], [0], [1], [0, 0, 1, 1], [], []>} : vector<8x8xf32>, vector<8x8xf32>, vector<8x8xf32> -> vector<8x8xf32>
    %80 = vector.extract_strided_slice %73 {offsets = [16, 0], sizes = [8, 8], strides = [1, 1]} : vector<64x8xf32> to vector<8x8xf32>
    %81 = vector.extract_strided_slice %17 {offsets = [0, 16], sizes = [8, 8], strides = [1, 1]} : vector<16x32xf32> to vector<8x8xf32>
    %cst_23 = arith.constant dense<0.000000e+00> : vector<8x8xf32>
    %82 = tpu.matmul %80, %81, %cst_23 {dimension_numbers = #tpu.dot_dimension_numbers<[1], [0], [0], [1], [0, 0, 1, 1], [], []>} : vector<8x8xf32>, vector<8x8xf32>, vector<8x8xf32> -> vector<8x8xf32>
    %83 = vector.extract_strided_slice %73 {offsets = [24, 0], sizes = [8, 8], strides = [1, 1]} : vector<64x8xf32> to vector<8x8xf32>
    %84 = vector.extract_strided_slice %17 {offsets = [0, 24], sizes = [8, 8], strides = [1, 1]} : vector<16x32xf32> to vector<8x8xf32>
    %cst_24 = arith.constant dense<0.000000e+00> : vector<8x8xf32>
    %85 = tpu.matmul %83, %84, %cst_24 {dimension_numbers = #tpu.dot_dimension_numbers<[1], [0], [0], [1], [0, 0, 1, 1], [], []>} : vector<8x8xf32>, vector<8x8xf32>, vector<8x8xf32> -> vector<8x8xf32>
    %86 = tpu.concatenate %76, %79, %82, %85 in 1 : vector<8x8xf32>, vector<8x8xf32>, vector<8x8xf32>, vector<8x8xf32> -> vector<8x32xf32>
    %87 = vector.extract_strided_slice %73 {offsets = [32, 0], sizes = [8, 8], strides = [1, 1]} : vector<64x8xf32> to vector<8x8xf32>
    %88 = vector.extract_strided_slice %17 {offsets = [8, 0], sizes = [8, 8], strides = [1, 1]} : vector<16x32xf32> to vector<8x8xf32>
    %cst_25 = arith.constant dense<0.000000e+00> : vector<8x8xf32>
    %89 = tpu.matmul %87, %88, %cst_25 {dimension_numbers = #tpu.dot_dimension_numbers<[1], [0], [0], [1], [0, 0, 1, 1], [], []>} : vector<8x8xf32>, vector<8x8xf32>, vector<8x8xf32> -> vector<8x8xf32>
    %90 = vector.extract_strided_slice %73 {offsets = [40, 0], sizes = [8, 8], strides = [1, 1]} : vector<64x8xf32> to vector<8x8xf32>
    %91 = vector.extract_strided_slice %17 {offsets = [8, 8], sizes = [8, 8], strides = [1, 1]} : vector<16x32xf32> to vector<8x8xf32>
    %cst_26 = arith.constant dense<0.000000e+00> : vector<8x8xf32>
    %92 = tpu.matmul %90, %91, %cst_26 {dimension_numbers = #tpu.dot_dimension_numbers<[1], [0], [0], [1], [0, 0, 1, 1], [], []>} : vector<8x8xf32>, vector<8x8xf32>, vector<8x8xf32> -> vector<8x8xf32>
    %93 = vector.extract_strided_slice %73 {offsets = [48, 0], sizes = [8, 8], strides = [1, 1]} : vector<64x8xf32> to vector<8x8xf32>
    %94 = vector.extract_strided_slice %17 {offsets = [8, 16], sizes = [8, 8], strides = [1, 1]} : vector<16x32xf32> to vector<8x8xf32>
    %cst_27 = arith.constant dense<0.000000e+00> : vector<8x8xf32>
    %95 = tpu.matmul %93, %94, %cst_27 {dimension_numbers = #tpu.dot_dimension_numbers<[1], [0], [0], [1], [0, 0, 1, 1], [], []>} : vector<8x8xf32>, vector<8x8xf32>, vector<8x8xf32> -> vector<8x8xf32>
    %96 = vector.extract_strided_slice %73 {offsets = [56, 0], sizes = [8, 8], strides = [1, 1]} : vector<64x8xf32> to vector<8x8xf32>
    %97 = vector.extract_strided_slice %17 {offsets = [8, 24], sizes = [8, 8], strides = [1, 1]} : vector<16x32xf32> to vector<8x8xf32>
    %cst_28 = arith.constant dense<0.000000e+00> : vector<8x8xf32>
    %98 = tpu.matmul %96, %97, %cst_28 {dimension_numbers = #tpu.dot_dimension_numbers<[1], [0], [0], [1], [0, 0, 1, 1], [], []>} : vector<8x8xf32>, vector<8x8xf32>, vector<8x8xf32> -> vector<8x8xf32>
    %99 = tpu.concatenate %89, %92, %95, %98 in 1 : vector<8x8xf32>, vector<8x8xf32>, vector<8x8xf32>, vector<8x8xf32> -> vector<8x32xf32>
    %100 = tpu.concatenate %86, %99 in 0 : vector<8x32xf32>, vector<8x32xf32> -> vector<16x32xf32>
    %cst_29 = arith.constant dense<0.000000e+00> : vector<16x32xf32>
    %101 = tpu.matmul %100, %18, %cst_29 {dimension_numbers = #tpu.dot_dimension_numbers<[1], [0], [0], [1], [0, 0, 1, 1], [], []>} : vector<16x32xf32>, vector<32x32xf32>, vector<16x32xf32> -> vector<16x32xf32>
    %102 = vector.broadcast %4 : vector<1x32xf32> to vector<16x32xf32>
    %103 = arith.addf %101, %102 : vector<16x32xf32>
    %104 = arith.addf %1, %103 : vector<16x32xf32>
    %cst_30 = arith.constant dense<0.000000e+00> : vector<16xf32>
    %105 = vector.multi_reduction <add>, %104, %cst_30 [1] : vector<16x32xf32> to vector<16xf32>
    %106 = vector.shape_cast %105 : vector<16xf32> to vector<16x1xf32>
    %cst_31 = arith.constant 3.200000e+01 : f32
    %107 = vector.broadcast %cst_31 : f32 to vector<16x1xf32>
    %108 = arith.divf %106, %107 : vector<16x1xf32>
    %109 = vector.broadcast %108 : vector<16x1xf32> to vector<16x32xf32>
    %110 = arith.subf %104, %109 : vector<16x32xf32>
    %111 = arith.mulf %110, %110 : vector<16x32xf32>
    %cst_32 = arith.constant dense<0.000000e+00> : vector<16xf32>
    %112 = vector.multi_reduction <add>, %111, %cst_32 [1] : vector<16x32xf32> to vector<16xf32>
    %113 = vector.shape_cast %112 : vector<16xf32> to vector<16x1xf32>
    %cst_33 = arith.constant 3.200000e+01 : f32
    %114 = vector.broadcast %cst_33 : f32 to vector<16x1xf32>
    %115 = arith.divf %113, %114 : vector<16x1xf32>
    %cst_34 = arith.constant 9.99999974E-6 : f32
    %116 = vector.broadcast %cst_34 : f32 to vector<16x1xf32>
    %117 = arith.addf %115, %116 : vector<16x1xf32>
    %118 = math.rsqrt %117 : vector<16x1xf32>
    %119 = vector.broadcast %118 : vector<16x1xf32> to vector<16x32xf32>
    %120 = arith.mulf %110, %119 : vector<16x32xf32>
    %121 = vector.broadcast %5 : vector<1x32xf32> to vector<16x32xf32>
    %122 = arith.mulf %120, %121 : vector<16x32xf32>
    %123 = vector.broadcast %6 : vector<1x32xf32> to vector<16x32xf32>
    %124 = arith.addf %122, %123 : vector<16x32xf32>
    %125 = vector.extract_strided_slice %2 {offsets = [0, 128], sizes = [32, 64], strides = [1, 1]} : vector<32x256xf32> to vector<32x64xf32>
    %cst_35 = arith.constant dense<0.000000e+00> : vector<16x64xf32>
    %126 = tpu.matmul %0, %125, %cst_35 {dimension_numbers = #tpu.dot_dimension_numbers<[1], [0], [0], [1], [0, 0, 1, 1], [], []>} : vector<16x32xf32>, vector<32x64xf32>, vector<16x64xf32> -> vector<16x64xf32>
    %127 = vector.extract_strided_slice %2 {offsets = [0, 192], sizes = [32, 32], strides = [1, 1]} : vector<32x256xf32> to vector<32x32xf32>
    %cst_36 = arith.constant dense<0.000000e+00> : vector<16x32xf32>
    %128 = tpu.matmul %124, %127, %cst_36 {dimension_numbers = #tpu.dot_dimension_numbers<[1], [0], [0], [1], [0, 0, 1, 1], [], []>} : vector<16x32xf32>, vector<32x32xf32>, vector<16x32xf32> -> vector<16x32xf32>
    %129 = vector.extract_strided_slice %126 {offsets = [0, 0], sizes = [16, 32], strides = [1, 1]} : vector<16x64xf32> to vector<16x32xf32>
    %130 = vector.extract_strided_slice %126 {offsets = [0, 32], sizes = [16, 32], strides = [1, 1]} : vector<16x64xf32> to vector<16x32xf32>
    %131 = vector.extract_strided_slice %2 {offsets = [0, 224], sizes = [32, 32], strides = [1, 1]} : vector<32x256xf32> to vector<32x32xf32>
    %132 = vector.extract_strided_slice %129 {offsets = [0, 0], sizes = [8, 8], strides = [1, 1]} : vector<16x32xf32> to vector<8x8xf32>
    %133 = vector.extract_strided_slice %130 {offsets = [0, 0], sizes = [8, 8], strides = [1, 1]} : vector<16x32xf32> to vector<8x8xf32>
    %cst_37 = arith.constant dense<0.000000e+00> : vector<8x8xf32>
    %134 = tpu.matmul %132, %133, %cst_37 {dimension_numbers = #tpu.dot_dimension_numbers<[1], [1], [0], [0], [0, 0, 1, 0], [], []>} : vector<8x8xf32>, vector<8x8xf32>, vector<8x8xf32> -> vector<8x8xf32>
    %135 = vector.extract_strided_slice %129 {offsets = [0, 8], sizes = [8, 8], strides = [1, 1]} : vector<16x32xf32> to vector<8x8xf32>
    %136 = vector.extract_strided_slice %130 {offsets = [0, 8], sizes = [8, 8], strides = [1, 1]} : vector<16x32xf32> to vector<8x8xf32>
    %cst_38 = arith.constant dense<0.000000e+00> : vector<8x8xf32>
    %137 = tpu.matmul %135, %136, %cst_38 {dimension_numbers = #tpu.dot_dimension_numbers<[1], [1], [0], [0], [0, 0, 1, 0], [], []>} : vector<8x8xf32>, vector<8x8xf32>, vector<8x8xf32> -> vector<8x8xf32>
    %138 = vector.extract_strided_slice %129 {offsets = [0, 16], sizes = [8, 8], strides = [1, 1]} : vector<16x32xf32> to vector<8x8xf32>
    %139 = vector.extract_strided_slice %130 {offsets = [0, 16], sizes = [8, 8], strides = [1, 1]} : vector<16x32xf32> to vector<8x8xf32>
    %cst_39 = arith.constant dense<0.000000e+00> : vector<8x8xf32>
    %140 = tpu.matmul %138, %139, %cst_39 {dimension_numbers = #tpu.dot_dimension_numbers<[1], [1], [0], [0], [0, 0, 1, 0], [], []>} : vector<8x8xf32>, vector<8x8xf32>, vector<8x8xf32> -> vector<8x8xf32>
    %141 = vector.extract_strided_slice %129 {offsets = [0, 24], sizes = [8, 8], strides = [1, 1]} : vector<16x32xf32> to vector<8x8xf32>
    %142 = vector.extract_strided_slice %130 {offsets = [0, 24], sizes = [8, 8], strides = [1, 1]} : vector<16x32xf32> to vector<8x8xf32>
    %cst_40 = arith.constant dense<0.000000e+00> : vector<8x8xf32>
    %143 = tpu.matmul %141, %142, %cst_40 {dimension_numbers = #tpu.dot_dimension_numbers<[1], [1], [0], [0], [0, 0, 1, 0], [], []>} : vector<8x8xf32>, vector<8x8xf32>, vector<8x8xf32> -> vector<8x8xf32>
    %144 = vector.extract_strided_slice %129 {offsets = [8, 0], sizes = [8, 8], strides = [1, 1]} : vector<16x32xf32> to vector<8x8xf32>
    %145 = vector.extract_strided_slice %130 {offsets = [8, 0], sizes = [8, 8], strides = [1, 1]} : vector<16x32xf32> to vector<8x8xf32>
    %cst_41 = arith.constant dense<0.000000e+00> : vector<8x8xf32>
    %146 = tpu.matmul %144, %145, %cst_41 {dimension_numbers = #tpu.dot_dimension_numbers<[1], [1], [0], [0], [0, 0, 1, 0], [], []>} : vector<8x8xf32>, vector<8x8xf32>, vector<8x8xf32> -> vector<8x8xf32>
    %147 = vector.extract_strided_slice %129 {offsets = [8, 8], sizes = [8, 8], strides = [1, 1]} : vector<16x32xf32> to vector<8x8xf32>
    %148 = vector.extract_strided_slice %130 {offsets = [8, 8], sizes = [8, 8], strides = [1, 1]} : vector<16x32xf32> to vector<8x8xf32>
    %cst_42 = arith.constant dense<0.000000e+00> : vector<8x8xf32>
    %149 = tpu.matmul %147, %148, %cst_42 {dimension_numbers = #tpu.dot_dimension_numbers<[1], [1], [0], [0], [0, 0, 1, 0], [], []>} : vector<8x8xf32>, vector<8x8xf32>, vector<8x8xf32> -> vector<8x8xf32>
    %150 = vector.extract_strided_slice %129 {offsets = [8, 16], sizes = [8, 8], strides = [1, 1]} : vector<16x32xf32> to vector<8x8xf32>
    %151 = vector.extract_strided_slice %130 {offsets = [8, 16], sizes = [8, 8], strides = [1, 1]} : vector<16x32xf32> to vector<8x8xf32>
    %cst_43 = arith.constant dense<0.000000e+00> : vector<8x8xf32>
    %152 = tpu.matmul %150, %151, %cst_43 {dimension_numbers = #tpu.dot_dimension_numbers<[1], [1], [0], [0], [0, 0, 1, 0], [], []>} : vector<8x8xf32>, vector<8x8xf32>, vector<8x8xf32> -> vector<8x8xf32>
    %153 = vector.extract_strided_slice %129 {offsets = [8, 24], sizes = [8, 8], strides = [1, 1]} : vector<16x32xf32> to vector<8x8xf32>
    %154 = vector.extract_strided_slice %130 {offsets = [8, 24], sizes = [8, 8], strides = [1, 1]} : vector<16x32xf32> to vector<8x8xf32>
    %cst_44 = arith.constant dense<0.000000e+00> : vector<8x8xf32>
    %155 = tpu.matmul %153, %154, %cst_44 {dimension_numbers = #tpu.dot_dimension_numbers<[1], [1], [0], [0], [0, 0, 1, 0], [], []>} : vector<8x8xf32>, vector<8x8xf32>, vector<8x8xf32> -> vector<8x8xf32>
    %156 = tpu.concatenate %134, %137, %140, %143, %146, %149, %152, %155 in 0 : vector<8x8xf32>, vector<8x8xf32>, vector<8x8xf32>, vector<8x8xf32>, vector<8x8xf32>, vector<8x8xf32>, vector<8x8xf32>, vector<8x8xf32> -> vector<64x8xf32>
    %cst_45 = arith.constant dense<0xFF800000> : vector<64xf32>
    %157 = vector.multi_reduction <maximumf>, %156, %cst_45 [1] : vector<64x8xf32> to vector<64xf32>
    %158 = vector.shape_cast %157 : vector<64xf32> to vector<64x1xf32>
    %159 = vector.broadcast %158 : vector<64x1xf32> to vector<64x8xf32>
    %160 = arith.subf %156, %159 : vector<64x8xf32>
    %161 = math.exp %160 : vector<64x8xf32>
    %cst_46 = arith.constant dense<0.000000e+00> : vector<64xf32>
    %162 = vector.multi_reduction <add>, %161, %cst_46 [1] : vector<64x8xf32> to vector<64xf32>
    %163 = vector.shape_cast %162 : vector<64xf32> to vector<64x1xf32>
    %164 = vector.broadcast %163 : vector<64x1xf32> to vector<64x8xf32>
    %165 = arith.divf %161, %164 : vector<64x8xf32>
    %166 = vector.extract_strided_slice %165 {offsets = [0, 0], sizes = [8, 8], strides = [1, 1]} : vector<64x8xf32> to vector<8x8xf32>
    %167 = vector.extract_strided_slice %128 {offsets = [0, 0], sizes = [8, 8], strides = [1, 1]} : vector<16x32xf32> to vector<8x8xf32>
    %cst_47 = arith.constant dense<0.000000e+00> : vector<8x8xf32>
    %168 = tpu.matmul %166, %167, %cst_47 {dimension_numbers = #tpu.dot_dimension_numbers<[1], [0], [0], [1], [0, 0, 1, 1], [], []>} : vector<8x8xf32>, vector<8x8xf32>, vector<8x8xf32> -> vector<8x8xf32>
    %169 = vector.extract_strided_slice %165 {offsets = [8, 0], sizes = [8, 8], strides = [1, 1]} : vector<64x8xf32> to vector<8x8xf32>
    %170 = vector.extract_strided_slice %128 {offsets = [0, 8], sizes = [8, 8], strides = [1, 1]} : vector<16x32xf32> to vector<8x8xf32>
    %cst_48 = arith.constant dense<0.000000e+00> : vector<8x8xf32>
    %171 = tpu.matmul %169, %170, %cst_48 {dimension_numbers = #tpu.dot_dimension_numbers<[1], [0], [0], [1], [0, 0, 1, 1], [], []>} : vector<8x8xf32>, vector<8x8xf32>, vector<8x8xf32> -> vector<8x8xf32>
    %172 = vector.extract_strided_slice %165 {offsets = [16, 0], sizes = [8, 8], strides = [1, 1]} : vector<64x8xf32> to vector<8x8xf32>
    %173 = vector.extract_strided_slice %128 {offsets = [0, 16], sizes = [8, 8], strides = [1, 1]} : vector<16x32xf32> to vector<8x8xf32>
    %cst_49 = arith.constant dense<0.000000e+00> : vector<8x8xf32>
    %174 = tpu.matmul %172, %173, %cst_49 {dimension_numbers = #tpu.dot_dimension_numbers<[1], [0], [0], [1], [0, 0, 1, 1], [], []>} : vector<8x8xf32>, vector<8x8xf32>, vector<8x8xf32> -> vector<8x8xf32>
    %175 = vector.extract_strided_slice %165 {offsets = [24, 0], sizes = [8, 8], strides = [1, 1]} : vector<64x8xf32> to vector<8x8xf32>
    %176 = vector.extract_strided_slice %128 {offsets = [0, 24], sizes = [8, 8], strides = [1, 1]} : vector<16x32xf32> to vector<8x8xf32>
    %cst_50 = arith.constant dense<0.000000e+00> : vector<8x8xf32>
    %177 = tpu.matmul %175, %176, %cst_50 {dimension_numbers = #tpu.dot_dimension_numbers<[1], [0], [0], [1], [0, 0, 1, 1], [], []>} : vector<8x8xf32>, vector<8x8xf32>, vector<8x8xf32> -> vector<8x8xf32>
    %178 = tpu.concatenate %168, %171, %174, %177 in 1 : vector<8x8xf32>, vector<8x8xf32>, vector<8x8xf32>, vector<8x8xf32> -> vector<8x32xf32>
    %179 = vector.extract_strided_slice %165 {offsets = [32, 0], sizes = [8, 8], strides = [1, 1]} : vector<64x8xf32> to vector<8x8xf32>
    %180 = vector.extract_strided_slice %128 {offsets = [8, 0], sizes = [8, 8], strides = [1, 1]} : vector<16x32xf32> to vector<8x8xf32>
    %cst_51 = arith.constant dense<0.000000e+00> : vector<8x8xf32>
    %181 = tpu.matmul %179, %180, %cst_51 {dimension_numbers = #tpu.dot_dimension_numbers<[1], [0], [0], [1], [0, 0, 1, 1], [], []>} : vector<8x8xf32>, vector<8x8xf32>, vector<8x8xf32> -> vector<8x8xf32>
    %182 = vector.extract_strided_slice %165 {offsets = [40, 0], sizes = [8, 8], strides = [1, 1]} : vector<64x8xf32> to vector<8x8xf32>
    %183 = vector.extract_strided_slice %128 {offsets = [8, 8], sizes = [8, 8], strides = [1, 1]} : vector<16x32xf32> to vector<8x8xf32>
    %cst_52 = arith.constant dense<0.000000e+00> : vector<8x8xf32>
    %184 = tpu.matmul %182, %183, %cst_52 {dimension_numbers = #tpu.dot_dimension_numbers<[1], [0], [0], [1], [0, 0, 1, 1], [], []>} : vector<8x8xf32>, vector<8x8xf32>, vector<8x8xf32> -> vector<8x8xf32>
    %185 = vector.extract_strided_slice %165 {offsets = [48, 0], sizes = [8, 8], strides = [1, 1]} : vector<64x8xf32> to vector<8x8xf32>
    %186 = vector.extract_strided_slice %128 {offsets = [8, 16], sizes = [8, 8], strides = [1, 1]} : vector<16x32xf32> to vector<8x8xf32>
    %cst_53 = arith.constant dense<0.000000e+00> : vector<8x8xf32>
    %187 = tpu.matmul %185, %186, %cst_53 {dimension_numbers = #tpu.dot_dimension_numbers<[1], [0], [0], [1], [0, 0, 1, 1], [], []>} : vector<8x8xf32>, vector<8x8xf32>, vector<8x8xf32> -> vector<8x8xf32>
    %188 = vector.extract_strided_slice %165 {offsets = [56, 0], sizes = [8, 8], strides = [1, 1]} : vector<64x8xf32> to vector<8x8xf32>
    %189 = vector.extract_strided_slice %128 {offsets = [8, 24], sizes = [8, 8], strides = [1, 1]} : vector<16x32xf32> to vector<8x8xf32>
    %cst_54 = arith.constant dense<0.000000e+00> : vector<8x8xf32>
    %190 = tpu.matmul %188, %189, %cst_54 {dimension_numbers = #tpu.dot_dimension_numbers<[1], [0], [0], [1], [0, 0, 1, 1], [], []>} : vector<8x8xf32>, vector<8x8xf32>, vector<8x8xf32> -> vector<8x8xf32>
    %191 = tpu.concatenate %181, %184, %187, %190 in 1 : vector<8x8xf32>, vector<8x8xf32>, vector<8x8xf32>, vector<8x8xf32> -> vector<8x32xf32>
    %192 = tpu.concatenate %178, %191 in 0 : vector<8x32xf32>, vector<8x32xf32> -> vector<16x32xf32>
    %cst_55 = arith.constant dense<0.000000e+00> : vector<16x32xf32>
    %193 = tpu.matmul %192, %131, %cst_55 {dimension_numbers = #tpu.dot_dimension_numbers<[1], [0], [0], [1], [0, 0, 1, 1], [], []>} : vector<16x32xf32>, vector<32x32xf32>, vector<16x32xf32> -> vector<16x32xf32>
    %194 = vector.broadcast %7 : vector<1x32xf32> to vector<16x32xf32>
    %195 = arith.addf %193, %194 : vector<16x32xf32>
    %196 = arith.addf %124, %195 : vector<16x32xf32>
    %cst_56 = arith.constant dense<0.000000e+00> : vector<16xf32>
    %197 = vector.multi_reduction <add>, %196, %cst_56 [1] : vector<16x32xf32> to vector<16xf32>
    %198 = vector.shape_cast %197 : vector<16xf32> to vector<16x1xf32>
    %cst_57 = arith.constant 3.200000e+01 : f32
    %199 = vector.broadcast %cst_57 : f32 to vector<16x1xf32>
    %200 = arith.divf %198, %199 : vector<16x1xf32>
    %201 = vector.broadcast %200 : vector<16x1xf32> to vector<16x32xf32>
    %202 = arith.subf %196, %201 : vector<16x32xf32>
    %203 = arith.mulf %202, %202 : vector<16x32xf32>
    %cst_58 = arith.constant dense<0.000000e+00> : vector<16xf32>
    %204 = vector.multi_reduction <add>, %203, %cst_58 [1] : vector<16x32xf32> to vector<16xf32>
    %205 = vector.shape_cast %204 : vector<16xf32> to vector<16x1xf32>
    %cst_59 = arith.constant 3.200000e+01 : f32
    %206 = vector.broadcast %cst_59 : f32 to vector<16x1xf32>
    %207 = arith.divf %205, %206 : vector<16x1xf32>
    %cst_60 = arith.constant 9.99999974E-6 : f32
    %208 = vector.broadcast %cst_60 : f32 to vector<16x1xf32>
    %209 = arith.addf %207, %208 : vector<16x1xf32>
    %210 = math.rsqrt %209 : vector<16x1xf32>
    %211 = vector.broadcast %210 : vector<16x1xf32> to vector<16x32xf32>
    %212 = arith.mulf %202, %211 : vector<16x32xf32>
    %213 = vector.broadcast %8 : vector<1x32xf32> to vector<16x32xf32>
    %214 = arith.mulf %212, %213 : vector<16x32xf32>
    %215 = vector.broadcast %9 : vector<1x32xf32> to vector<16x32xf32>
    %216 = arith.addf %214, %215 : vector<16x32xf32>
    %c0_61 = arith.constant 0 : index
    %c0_62 = arith.constant 0 : index
    %217 = vector.load %arg5[%c0_61, %c0_62] : memref<65x2048xf32, #tpu.memory_space<vmem>>, vector<32x2048xf32>
    %c32 = arith.constant 32 : index
    %c0_63 = arith.constant 0 : index
    %218 = vector.load %arg5[%c32, %c0_63] : memref<65x2048xf32, #tpu.memory_space<vmem>>, vector<32x2048xf32>
    %c64 = arith.constant 64 : index
    %c0_64 = arith.constant 0 : index
    %219 = vector.load %arg5[%c64, %c0_64] : memref<65x2048xf32, #tpu.memory_space<vmem>>, vector<1x2048xf32>
    %cst_65 = arith.constant dense<0.000000e+00> : vector<16x2048xf32>
    %220 = tpu.matmul %216, %217, %cst_65 {dimension_numbers = #tpu.dot_dimension_numbers<[1], [0], [0], [1], [0, 0, 1, 1], [], []>} : vector<16x32xf32>, vector<32x2048xf32>, vector<16x2048xf32> -> vector<16x2048xf32>
    %221 = vector.broadcast %219 : vector<1x2048xf32> to vector<16x2048xf32>
    %222 = arith.addf %220, %221 : vector<16x2048xf32>
    %cst_66 = arith.constant 0.000000e+00 : f32
    %223 = vector.broadcast %cst_66 : f32 to vector<16x2048xf32>
    %224 = arith.maximumf %222, %223 : vector<16x2048xf32>
    %cst_67 = arith.constant dense<0.000000e+00> : vector<16x32xf32>
    %225 = tpu.matmul %224, %218, %cst_67 {dimension_numbers = #tpu.dot_dimension_numbers<[1], [1], [0], [0], [0, 0, 1, 0], [], []>} : vector<16x2048xf32>, vector<32x2048xf32>, vector<16x32xf32> -> vector<16x32xf32>
    %226 = vector.broadcast %10 : vector<1x32xf32> to vector<16x32xf32>
    %227 = arith.addf %225, %226 : vector<16x32xf32>
    %228 = arith.addf %216, %227 : vector<16x32xf32>
    %cst_68 = arith.constant dense<0.000000e+00> : vector<16xf32>
    %229 = vector.multi_reduction <add>, %228, %cst_68 [1] : vector<16x32xf32> to vector<16xf32>
    %230 = vector.shape_cast %229 : vector<16xf32> to vector<16x1xf32>
    %cst_69 = arith.constant 3.200000e+01 : f32
    %231 = vector.broadcast %cst_69 : f32 to vector<16x1xf32>
    %232 = arith.divf %230, %231 : vector<16x1xf32>
    %233 = vector.broadcast %232 : vector<16x1xf32> to vector<16x32xf32>
    %234 = arith.subf %228, %233 : vector<16x32xf32>
    %235 = arith.mulf %234, %234 : vector<16x32xf32>
    %cst_70 = arith.constant dense<0.000000e+00> : vector<16xf32>
    %236 = vector.multi_reduction <add>, %235, %cst_70 [1] : vector<16x32xf32> to vector<16xf32>
    %237 = vector.shape_cast %236 : vector<16xf32> to vector<16x1xf32>
    %cst_71 = arith.constant 3.200000e+01 : f32
    %238 = vector.broadcast %cst_71 : f32 to vector<16x1xf32>
    %239 = arith.divf %237, %238 : vector<16x1xf32>
    %cst_72 = arith.constant 9.99999974E-6 : f32
    %240 = vector.broadcast %cst_72 : f32 to vector<16x1xf32>
    %241 = arith.addf %239, %240 : vector<16x1xf32>
    %242 = math.rsqrt %241 : vector<16x1xf32>
    %243 = vector.broadcast %242 : vector<16x1xf32> to vector<16x32xf32>
    %244 = arith.mulf %234, %243 : vector<16x32xf32>
    %245 = vector.broadcast %11 : vector<1x32xf32> to vector<16x32xf32>
    %246 = arith.mulf %244, %245 : vector<16x32xf32>
    %247 = vector.broadcast %12 : vector<1x32xf32> to vector<16x32xf32>
    %248 = arith.addf %246, %247 : vector<16x32xf32>
    %c0_73 = arith.constant 0 : index
    %c0_74 = arith.constant 0 : index
    %249 = vector.load %arg6[%c0_73, %c0_74] : memref<16x32xf32, #tpu.memory_space<vmem>>, vector<16x32xf32>
    tpu.vector_store %arg6[%c0_73, %c0_74], %248 {strides = array<i32>} : memref<16x32xf32, #tpu.memory_space<vmem>>, vector<16x32xf32>,
    return
  }
  func.func @transform_0(%arg0: i32) -> (i32, i32) {
    %c0_i32 = arith.constant 0 : i32
    %c0_i32_0 = arith.constant 0 : i32
    %c0_i32_1 = arith.constant 0 : i32
    return %c0_i32, %c0_i32_0 : i32, i32
  }
  func.func @transform_1(%arg0: i32) -> (i32, i32) {
    %c0_i32 = arith.constant 0 : i32
    %c0_i32_0 = arith.constant 0 : i32
    %c0_i32_1 = arith.constant 0 : i32
    return %c0_i32, %c0_i32_0 : i32, i32
  }
  func.func @transform_2(%arg0: i32) -> (i32, i32) {
    %c0_i32 = arith.constant 0 : i32
    %c0_i32_0 = arith.constant 0 : i32
    %c0_i32_1 = arith.constant 0 : i32
    return %c0_i32, %c0_i32_0 : i32, i32
  }
  func.func @transform_3(%arg0: i32) -> (i32, i32) {
    %c0_i32 = arith.constant 0 : i32
    %c0_i32_0 = arith.constant 0 : i32
    %c0_i32_1 = arith.constant 0 : i32
    return %c0_i32, %c0_i32_0 : i32, i32
  }
  func.func @transform_4(%arg0: i32) -> (i32, i32) {
    %c0_i32 = arith.constant 0 : i32
    %c0_i32_0 = arith.constant 0 : i32
    %c0_i32_1 = arith.constant 0 : i32
    return %c0_i32, %c0_i32_0 : i32, i32
  }
  func.func @transform_5(%arg0: i32) -> (i32, i32) {
    %c0_i32 = arith.constant 0 : i32
    %c0_i32_0 = arith.constant 0 : i32
    %c0_i32_1 = arith.constant 0 : i32
    return %c0_i32, %c0_i32_0 : i32, i32
  }
}

</mosaic_0001>

<bundles_post_ra>
// kernel: tpu_custom_call.1
= control target key start
LH: loop header
LB: loop body
LE: loop exit
PB: predicated region body
PF: predicated region fallthrough
CT: control target
= control target key end

     0   :  { %10 = vsyncpa [#allocation3], 0  ;;  %s6285_s0 = inlined_call_operand.hbm [shape: f32[16,32], index: 0, kind: input, shape index: {}]   ;;  %s6286_s1 = inlined_call_operand.hbm [shape: f32[16,32], index: 1, kind: input, shape index: {}]   ;;  %s6287_s2 = inlined_call_operand.hbm [shape: f32[32,256], index: 2, kind: input, shape index: {}]   ;;  %s6288_s3 = inlined_call_operand.hbm [shape: f32[9,32], index: 3, kind: input, shape index: {}]   ;;  %s6289_s4 = inlined_call_operand.hbm [shape: f32[65,2048], index: 4, kind: input, shape index: {}]   ;;  %s6290_s5 = inlined_call_operand.hbm [shape: f32[16,32], index: 5, kind: output, shape index: {}]  }
   0x1   :  { %11 = vsyncpa [#allocation6], 0 }
   0x2   :  { %12 = vsyncpa [#allocation9], 0 }
   0x3   :  { %13 = vsyncpa [#allocation4], 0  ;;  %s5612_s18 = smov [#allocation5]   ;;  %s5613_s20 = smov [#allocation8]  }
   0x4   :  { %s31_s19 = sshll.u32 %s5612_s18, 4  ;;  %s55_s21 = sshll.u32 %s5613_s20, 4  ;;  %s32_s19 = int_to_ptr.vmem [resolvable:$true] %s31_s19  ;;  %s56_s21 = int_to_ptr.vmem [resolvable:$true] %s55_s21 }
   0x5   :  { %s5492_s22 = scalar_lea.vmem %s32_s19, 256  ;;  %p5497_p1 = scmp.lt.s32.totalorder %s32_s19, %s32_s19 }
   0x6   :  { %p5493_p0 = scmp.ne.s32.totalorder %s32_s19, %s5492_s22  ;;  %p5498_p2 = scmp.lt.s32.totalorder %s5492_s22, %s5492_s22 }
   0x8   :  { %p5499_p3 = por %p5498_p2, %p5497_p1 }
   0xa   :  { %p5500_p4 = pnand %p5499_p3, %p5493_p0 }
   0xc   :  { %5503 = shalt.err (!%p5500_p4)
}
   0xd   :  { %s5614_s23 = smov 128   ;;  %s5615_s24 = smov 8  }
   0xe   :  { %37 = dma.hbm_to_vmem [thread:$0]  %s6286_s1, 256, %s32_s19, [#allocation6], %s5614_s23, %s5614_s23, %s5615_s24  }
   0xf   :  { %s5512_s27 = scalar_lea.vmem %s56_s21, 256  ;;  %p5517_p6 = scmp.lt.s32.totalorder %s56_s21, %s56_s21 }
  0x10   :  { %p5513_p5 = scmp.ne.s32.totalorder %s56_s21, %s5512_s27  ;;  %p5518_p7 = scmp.lt.s32.totalorder %s5512_s27, %s5512_s27 }
  0x12   :  { %p5519_p8 = por %p5518_p7, %p5517_p6 }
  0x14   :  { %p5520_p9 = pnand %p5519_p8, %p5513_p5 }
  0x16   :  { %5523 = shalt.err (!%p5520_p9)
}
  0x17   :  { %61 = dma.hbm_to_vmem [thread:$0]  %s6288_s3, 256, %s56_s21, [#allocation9], %s5614_s23, %s5614_s23, %s5615_s24  }
  0x18   :  { %s5616_s30 = smov [#allocation2]   ;;  %s5617_s7 = smov [#allocation7]  }
  0x19   :  { %s19_s6 = sshll.u32 %s5616_s30, 4  ;;  %s43_s8 = sshll.u32 %s5617_s7, 4  ;;  %s20_s6 = int_to_ptr.vmem [resolvable:$true] %s19_s6  ;;  %s44_s8 = int_to_ptr.vmem [resolvable:$true] %s43_s8 }
  0x1a   :  { %s5532_s1 = scalar_lea.vmem %s20_s6, 256  ;;  %p5537_p11 = scmp.lt.s32.totalorder %s20_s6, %s20_s6 }
  0x1b   :  { %p5533_p10 = scmp.ne.s32.totalorder %s20_s6, %s5532_s1  ;;  %p5538_p12 = scmp.lt.s32.totalorder %s5532_s1, %s5532_s1 }
  0x1d   :  { %p5539_p13 = por %p5538_p12, %p5537_p11 }
  0x1f   :  { %p5540_p0 = pnand %p5539_p13, %p5533_p10 }
  0x21   :  { %5543 = shalt.err (!%p5540_p0)
}
  0x22   :  { %25 = dma.hbm_to_vmem [thread:$0]  %s6285_s0, 256, %s20_s6, [#allocation3], %s5614_s23, %s5614_s23, %s5615_s24  }
  0x23   :  { %s5552_s3 = scalar_lea.vmem %s44_s8, 1024  ;;  %p5557_p2 = scmp.lt.s32.totalorder %s44_s8, %s44_s8 }
  0x24   :  { %p5553_p1 = scmp.ne.s32.totalorder %s44_s8, %s5552_s3  ;;  %p5558_p3 = scmp.lt.s32.totalorder %s5552_s3, %s5552_s3 }
  0x26   :  { %p5559_p4 = por %p5558_p3, %p5557_p2 }
  0x28   :  { %p5560_p5 = pnand %p5559_p4, %p5553_p1 }
  0x2a   :  { %5563 = shalt.err (!%p5560_p5)
}
  0x2b   :  { %s5618_s11 = smov 256   ;;  %s5619_s12 = smov 16  }
  0x2c   :  { %49 = dma.hbm_to_vmem [thread:$0]  %s6287_s2, 1024, %s44_s8, [#allocation6], %s5618_s11, %s5618_s11, %s5619_s12  }
  0x2d   :  { %s5620_s15 = smov [#allocation10]  }
  0x2e   :  { %s67_s16 = sshll.u32 %s5620_s15, 4  ;;  %s68_s16 = int_to_ptr.vmem [resolvable:$true] %s67_s16 }
  0x2f   :  { %s5572_s17 = scalar_lea.vmem %s68_s16, 18432  ;;  %p5577_p7 = scmp.lt.s32.totalorder %s68_s16, %s68_s16 }
  0x30   :  { %p5573_p6 = scmp.ne.s32.totalorder %s68_s16, %s5572_s17  ;;  %p5578_p8 = scmp.lt.s32.totalorder %s5572_s17, %s5572_s17 }
  0x32   :  { %p5579_p9 = por %p5578_p8, %p5577_p7 }
  0x34   :  { %p5580_p10 = pnand %p5579_p9, %p5573_p6 }
  0x36   :  { %5583 = shalt.err (!%p5580_p10)
}
  0x37   :  { %s5621_s0 = smov 2048  }
  0x38   :  { %73 = dma.hbm_to_vmem [thread:$0]  %s6289_s4, 18432, %s68_s16, [#allocation9], %s5621_s0, %s5621_s0, %s5614_s23  }
  0x39   :  { %5604 = dma.done.wait [#allocation3], 256  }
  0x3a   :  { %5605 = vsyncadd [#allocation3], 4294967040 }
  0x3b   :  { %5606 = dma.done.wait [#allocation6], 1280  }
  0x3c   :  { %5607 = vsyncadd [#allocation6], 4294966016 }
  0x3d   :  { %5608 = dma.done.wait [#allocation9], 18688  }
  0x3e   :  { %5609 = vsyncadd [#allocation9], 4294948608  ;;  %vm103_vm0 = vcmask 261120   ;;  %v5694_v0 = vld [vmem:[#allocation7 + $0x30] sm:$0xff]  ;;  %v5696_v1 = vld [vmem:[#allocation7 + $0x20] sm:$0xff]  ;;  %v5622_v6 = vmov 0.0   ;;  %v808_v23 = vlaneseq }
  0x3f   :  { %5166 = vmatprep.subr.mxu0 %v5694_v0  ;;  %v5699_v2 = vld [vmem:[#allocation5] sm:$0xff]  ;;  %v5708_v4 = vld [vmem:[#allocation7] sm:$0xff]  ;;  %v5712_v5 = vld [vmem:[#allocation5 + $0x8] sm:$0xff]  ;;  %5177 = vmatprep.subr.mxu1 %v5622_v6  ;;  %vm5623_vm1 = vmmov 0   ;;  %s5624_s2 = smov 96   ;;  %s5625_s4 = smov 120  }
  0x40   :  { %5167 = vmatpush3.msra.mxu0 %v5694_v0  ;;  %v5702_v3 = vld [vmem:[#allocation7 + $0x10] sm:$0xff]  ;;  %5174 = vmatprep.mubr.msk.f32.mxu0 %vm103_vm0, %v5699_v2  ;;  %s5626_s20 = smov 88   ;;  %s5627_s21 = smov 80   ;;  %vm188_vm2 = vcmask 64512   ;;  %v5798_v24 = vshrl.u32 %v808_v23, 7  ;;  %v914_v28 = vand.u32 127, %v808_v23 }
  0x41   :  { %5168 = vmatprep.subr.mxu0 %v5696_v1  ;;  %5179 = vmatprep.mubr.msk.f32.mxu1 %vm5623_vm1, %v5622_v6  ;;  %s5628_s22 = smov 72   ;;  %s5629_s25 = smov 112   ;;  %vm1336_vm11 = vcmask 130048   ;;  %vm1338_vm12 = vcmask 195584  }
  0x42   :  { %5169 = vmatpush3.msra.mxu0 %v5696_v1  ;;  %s5630_s26 = smov 104   ;;  %v821_v25 = vand.u32 7, %v5798_v24  ;;  %v810_v26 = vadd.s32 8, %v5798_v24  ;;  %v813_v27 = vadd.s32 32, %v5798_v24  ;;  %v811_v31 = vadd.s32 16, %v5798_v24  ;;  %s5631_s27 = smov 64  }
  0x43   :  { %5170 = vmatprep.subr.mxu0 %v5702_v3  ;;  %v812_v38 = vadd.s32 24, %v5798_v24  ;;  %v814_v46 = vadd.s32 40, %v5798_v24  ;;  %v815_v53 = vadd.s32 48, %v5798_v24  ;;  %v816_v54 = vadd.s32 56, %v5798_v24  ;;  %s5632_s28 = smov 48   ;;  %s5633_s29 = smov 56  }
  0x44   :  { %5171 = vmatpush3.msra.mxu0 %v5702_v3  ;;  %vm915_vm3 = vcmp.gt.s32.totalorder %v914_v28, %v821_v25  ;;  %v828_v30 = vand.u32 7, %v810_v26  ;;  %v849_v32 = vand.u32 7, %v813_v27  ;;  %v835_v39 = vand.u32 7, %v811_v31  ;;  %s5634_s30 = smov 40   ;;  %s5635_s6 = smov 32  }
  0x45   :  { %5172 = vmatprep.subr.mxu0 %v5708_v4  ;;  %v842_v44 = vand.u32 7, %v812_v38  ;;  %v856_v52 = vand.u32 7, %v814_v46  ;;  %v863_v59 = vand.u32 7, %v815_v53  ;;  %v870_v60 = vand.u32 7, %v816_v54  ;;  %s5636_s7 = smov 24   ;;  %s5637_s8 = smov [#allocation11]  }
  0x46   :  { %5173 = vmatpush3.msra.mxu0 %v5708_v4  ;;  %vm916_vm4 = vcmp.gt.s32.totalorder %v914_v28, %v828_v30  ;;  %vm919_vm5 = vcmp.gt.s32.totalorder %v914_v28, %v849_v32  ;;  %vm917_vm6 = vcmp.gt.s32.totalorder %v914_v28, %v835_v39  ;;  %s4983_s1 = sshll.u32 %s5637_s8, 4  ;;  %s4984_s1 = int_to_ptr.vmem [resolvable:$true] %s4983_s1 }
  0x47   :  { %5175 = vmatmul.mubr.msk.f32.vlgmr.msra.gmra.mxu0 %vm103_vm0, %v5712_v5  ;;  %5197 = vmatprep.subr.mxu0 %v5622_v6  ;;  %vm918_vm7 = vcmp.gt.s32.totalorder %v914_v28, %v842_v44  ;;  %vm920_vm8 = vcmp.gt.s32.totalorder %v914_v28, %v856_v52  ;;  %vm921_vm9 = vcmp.gt.s32.totalorder %v914_v28, %v863_v59  ;;  %s5584_s9 = scalar_lea.vmem %s4984_s1, 256  ;;  %p5589_p12 = scmp.lt.s32.totalorder %s4984_s1, %s4984_s1 }
  0x48   :  { %5199 = vmatprep.mubr.msk.f32.mxu0 %vm5623_vm1, %v5622_v6  ;;  %vm922_vm10 = vcmp.gt.s32.totalorder %v914_v28, %v870_v60  ;;  %p5585_p11 = scmp.ne.s32.totalorder %s4984_s1, %s5584_s9  ;;  %p5590_p13 = scmp.lt.s32.totalorder %s5584_s9, %s5584_s9 }
  0x4a   :  { %p5591_p0 = por %p5590_p13, %p5589_p12 }
  0x4c   :  { %p5592_p1 = pnand %p5591_p0, %p5585_p11 }
 0x107   :  { %v5724_v7 = vpop.f32.mrf.mxu0 }
 0x108   :  { %498 = vrot.lane.b32.xlu1 %v5724_v7, %s5624_s2 }
 0x109   :  { %v5728_v8 = vpop.f32.mrf.mxu0 }
 0x10a   :  { %186 = vrot.lane.b32.xlu0 %v5728_v8, %s5624_s2 }
 0x10c   :  { %263 = vrot.lane.b32.xlu1 %v5728_v8, %s5625_s4 }
 0x10e   :  { %265 = vrot.lane.b32.xlu0 %v5728_v8, %s5626_s20 }
 0x110   :  { %343 = vrot.lane.b32.xlu1 %v5728_v8, %s5627_s21 }
 0x112   :  { %576 = vrot.lane.b32.xlu0 %v5724_v7, %s5626_s20 }
 0x114   :  { %421 = vrot.lane.b32.xlu1 %v5728_v8, %s5628_s22 }
 0x116   :  { %341 = vrot.lane.b32.xlu0 %v5728_v8, %s5629_s25 }
 0x118   :  { %574 = vrot.lane.b32.xlu1 %v5724_v7, %s5625_s4 }
 0x11a   :  { %419 = vrot.lane.b32.xlu0 %v5728_v8, %s5630_s26 }
 0x11c   :  { %732 = vrot.lane.b32.xlu1 %v5724_v7, %s5628_s22 }
 0x11e   :  { %654 = vrot.lane.b32.xlu0 %v5724_v7, %s5627_s21 }
 0x120   :  { %730 = vrot.lane.b32.xlu1 %v5724_v7, %s5630_s26 }
 0x122   :  { %652 = vrot.lane.b32.xlu0 %v5724_v7, %s5629_s25 }
 0x17a   :  { %v499_v9 = vpop.permute.xlu1 %498 }
 0x17b   :  { %5198 = vmatpush3.xpose.msk.msra.mxu0 %vm188_vm2, %v499_v9 }
 0x17c   :  { %v187_v10 = vpop.permute.xlu0 %186  ;;  %5207 = vmatprep.subr.mxu0 %v5622_v6 }
 0x17d   :  { %5178 = vmatpush3.xpose.msk.msra.mxu1 %vm188_vm2, %v187_v10 }
 0x17e   :  { %5200 = vmatmul.mubr.msk.f32.vlgmr.msra.gmra.mxu0 %vm188_vm2, %v5724_v7  ;;  %v264_v11 = vpop.permute.xlu1 %263  ;;  %5182 = vmatprep.subr.mxu1 %v5622_v6 }
 0x17f   :  { %5209 = vmatprep.mubr.msk.f32.mxu0 %vm5623_vm1, %v5622_v6 }
 0x180   :  { %5180 = vmatmul.mubr.msk.f32.vlgmr.msra.gmra.mxu1 %vm188_vm2, %v5728_v8  ;;  %v266_v12 = vpop.permute.xlu0 %265 }
 0x181   :  { %5183 = vmatpush3.xpose.msk.msra.mxu1 %vm188_vm2, %v266_v12  ;;  %5184 = vmatprep.mubr.msk.f32.mxu1 %vm5623_vm1, %v5622_v6 }
 0x182   :  { %v344_v13 = vpop.permute.xlu1 %343  ;;  %5187 = vmatprep.subr.mxu1 %v5622_v6 }
 0x184   :  { %5185 = vmatmul.mubr.msk.f32.vlgmr.msra.gmra.mxu1 %vm188_vm2, %v264_v11  ;;  %v577_v14 = vpop.permute.xlu0 %576 }
 0x185   :  { %5188 = vmatpush3.xpose.msk.msra.mxu1 %vm188_vm2, %v344_v13  ;;  %5189 = vmatprep.mubr.msk.f32.mxu1 %vm5623_vm1, %v5622_v6 }
 0x186   :  { %v422_v15 = vpop.permute.xlu1 %421  ;;  %5192 = vmatprep.subr.mxu1 %v5622_v6 }
 0x188   :  { %v342_v16 = vpop.permute.xlu0 %341 }
 0x189   :  { %5190 = vmatmul.mubr.msk.f32.vlgmr.msra.gmra.mxu1 %vm188_vm2, %v342_v16 }
 0x18a   :  { %5193 = vmatpush3.xpose.msk.msra.mxu1 %vm188_vm2, %v422_v15  ;;  %v575_v17 = vpop.permute.xlu1 %574  ;;  %5194 = vmatprep.mubr.msk.f32.mxu1 %vm5623_vm1, %v5622_v6 }
 0x18b   :  { %5202 = vmatprep.subr.mxu1 %v5622_v6 }
 0x18c   :  { %v420_v18 = vpop.permute.xlu0 %419 }
 0x18d   :  { %5195 = vmatmul.mubr.msk.f32.vlgmr.msra.gmra.mxu1 %vm188_vm2, %v420_v18 }
 0x18e   :  { %5203 = vmatpush3.xpose.msk.msra.mxu1 %vm188_vm2, %v577_v14  ;;  %v733_v19 = vpop.permute.xlu1 %732  ;;  %5204 = vmatprep.mubr.msk.f32.mxu1 %vm5623_vm1, %v5622_v6 }
 0x18f   :  { %5212 = vmatprep.subr.mxu1 %v5622_v6 }
 0x190   :  { %v655_v20 = vpop.permute.xlu0 %654 }
 0x191   :  { %5205 = vmatmul.mubr.msk.f32.vlgmr.msra.gmra.mxu1 %vm188_vm2, %v575_v17  ;;  %5208 = vmatpush3.xpose.msk.msra.mxu0 %vm188_vm2, %v655_v20 }
 0x192   :  { %5213 = vmatpush3.xpose.msk.msra.mxu1 %vm188_vm2, %v733_v19  ;;  %5214 = vmatprep.mubr.msk.f32.mxu1 %vm5623_vm1, %v5622_v6  ;;  %v731_v21 = vpop.permute.xlu1 %730 }
 0x193   :  { %5217 = vmatprep.subr.mxu0 %v5622_v6  ;;  %5222 = vmatprep.subr.mxu1 %v5622_v6 }
 0x194   :  { %v653_v22 = vpop.permute.xlu0 %652 }
 0x195   :  { %5210 = vmatmul.mubr.msk.f32.vlgmr.msra.gmra.mxu0 %vm188_vm2, %v653_v22  ;;  %5215 = vmatmul.mubr.msk.f32.vlgmr.msra.gmra.mxu1 %vm188_vm2, %v731_v21 }
 0x196   :  { %5224 = vmatprep.mubr.msk.f32.mxu1 %vm5623_vm1, %v5622_v6  ;;  %5219 = vmatprep.mubr.msk.f32.mxu0 %vm5623_vm1, %v5622_v6 }
 0x23e   :  { %v570_v29 = vpop.f32.mrf.mxu0 }
 0x23f   :  { %v927_v45 = vsel %vm919_vm5, -1e+30, %v570_v29 }
 0x240   :  { %v259_v33 = vpop.f32.mrf.mxu1  ;;  %v5201_v34 = vpop.f32.mrf.mxu0  ;;  %v943_v49 = vsel %vm188_vm2, %v927_v45, -inf }
 0x241   :  { %v5804_v35 = vsel %vm915_vm3, -1e+30, %v259_v33 }
 0x242   :  { %v5181_v36 = vpop.f32.mrf.mxu1  ;;  %v931_v37 = vsel %vm188_vm2, %v5804_v35, -inf }
 0x243   :  { %932 = vmax.xlane.f32.xlu0 %v931_v37 }
 0x244   :  { %v337_v40 = vpop.f32.mrf.mxu1 }
 0x245   :  { %v924_v41 = vsel %vm916_vm4, -1e+30, %v337_v40 }
 0x246   :  { %v5186_v42 = vpop.f32.mrf.mxu1  ;;  %v934_v43 = vsel %vm188_vm2, %v924_v41, -inf }
 0x247   :  { %935 = vmax.xlane.f32.xlu1 %v934_v43 }
 0x249   :  { %v415_v47 = vpop.f32.mrf.mxu1 }
 0x24a   :  { %v5811_v48 = vsel %vm917_vm6, -1e+30, %v415_v47 }
 0x24b   :  { %v5191_v50 = vpop.f32.mrf.mxu1  ;;  %944 = vmax.xlane.f32.xlu1 %v943_v49  ;;  %v937_v51 = vsel %vm188_vm2, %v5811_v48, -inf }
 0x24c   :  { %938 = vmax.xlane.f32.xlu0 %v937_v51 }
 0x24d   :  { %v493_v55 = vpop.f32.mrf.mxu1 }
 0x24e   :  { %v926_v56 = vsel %vm918_vm7, -1e+30, %v493_v55 }
 0x24f   :  { %v5196_v57 = vpop.f32.mrf.mxu1  ;;  %v940_v58 = vsel %vm188_vm2, %v926_v56, -inf }
 0x250   :  { %941 = vmax.xlane.f32.xlu0 %v940_v58 }
 0x251   :  { %v648_v61 = vpop.f32.mrf.mxu1 }
 0x252   :  { %v928_v62 = vsel %vm920_vm8, -1e+30, %v648_v61 }
 0x253   :  { %v5206_v63 = vpop.f32.mrf.mxu1  ;;  %v946_v9 = vsel %vm188_vm2, %v928_v62, -inf }
 0x254   :  { %947 = vmax.xlane.f32.xlu0 %v946_v9 }
 0x255   :  { %v726_v10 = vpop.f32.mrf.mxu0  ;;  %v804_v11 = vpop.f32.mrf.mxu1 }
 0x256   :  { %v929_v12 = vsel %vm921_vm9, -1e+30, %v726_v10  ;;  %v930_v13 = vsel %vm922_vm10, -1e+30, %v804_v11 }
 0x257   :  { %v5211_v14 = vpop.f32.mrf.mxu0  ;;  %v5216_v15 = vpop.f32.mrf.mxu1  ;;  %v952_v16 = vsel %vm188_vm2, %v930_v13, -inf  ;;  %v949_v17 = vsel %vm188_vm2, %v929_v12, -inf }
 0x258   :  { %953 = vmax.xlane.f32.xlu0 %v952_v16  ;;  %950 = vmax.xlane.f32.xlu1 %v949_v17 }
 0x269   :  { %1019 = vrot.lane.b32.xlu1 %v5728_v8, %s5631_s27 }
 0x26d   :  { %1171 = vrot.lane.b32.xlu1 %v5728_v8, %s5632_s28 }
 0x26e   :  { %1095 = vrot.lane.b32.xlu0 %v5728_v8, %s5633_s29 }
 0x271   :  { %1247 = vrot.lane.b32.xlu1 %v5728_v8, %s5634_s30 }
 0x272   :  { %1340 = vrot.lane.b32.xlu0 %v5724_v7, %s5631_s27 }
 0x275   :  { %1416 = vrot.lane.b32.xlu1 %v5724_v7, %s5633_s29 }
 0x2cc   :  { %v933_v18 = vpop.xlane.xlu0 %932 }
 0x2cd   :  { %v955_v21 = vsub.f32 %v5804_v35, %v933_v18 }
 0x2cf   :  { %v963_v27 = vmul.f32 1.442695, %v955_v21 }
 0x2d0   :  { %v936_v19 = vpop.xlane.xlu1 %935 }
 0x2d1   :  { %v956_v20 = vsub.f32 %v924_v41, %v936_v19 }
 0x2d3   :  { %v965_v22 = vmul.f32 1.442695, %v956_v20 }
 0x2d4   :  { %v945_v23 = vpop.xlane.xlu1 %944 }
 0x2d5   :  { %5407 = vpow2.f32 %v965_v22  ;;  %v959_v25 = vsub.f32 %v927_v45, %v945_v23  ;;  %v939_v26 = vpop.xlane.xlu0 %938 }
 0x2d6   :  { %v957_v34 = vsub.f32 %v5811_v48, %v939_v26 }
 0x2d7   :  { %v971_v28 = vmul.f32 1.442695, %v959_v25 }
 0x2d8   :  { %v967_v43 = vmul.f32 1.442695, %v957_v34 }
 0x2d9   :  { %5409 = vpow2.f32 %v971_v28  ;;  %v942_v29 = vpop.xlane.xlu0 %941 }
 0x2da   :  { %v958_v8 = vsub.f32 %v926_v56, %v942_v29  ;;  %5411 = vpow2.f32 %v963_v27 }
 0x2dc   :  { %v969_v30 = vmul.f32 1.442695, %v958_v8 }
 0x2dd   :  { %v948_v31 = vpop.xlane.xlu0 %947 }
 0x2de   :  { %5413 = vpow2.f32 %v969_v30  ;;  %v960_v32 = vsub.f32 %v928_v62, %v948_v31 }
 0x2e0   :  { %v973_v33 = vmul.f32 1.442695, %v960_v32 }
 0x2e1   :  { %v954_v36 = vpop.xlane.xlu0 %953  ;;  %v951_v35 = vpop.xlane.xlu1 %950 }
 0x2e2   :  { %v5408_v37 = vpop.eup %5407  ;;  %5415 = vpow2.f32 %v973_v33  ;;  %v962_v38 = vsub.f32 %v930_v13, %v954_v36  ;;  %v961_v39 = vsub.f32 %v929_v12, %v951_v35 }
 0x2e3   :  { %v982_v40 = vsel %vm188_vm2, %v5408_v37, 0.0 }
 0x2e4   :  { %v977_v41 = vmul.f32 1.442695, %v962_v38  ;;  %v975_v42 = vmul.f32 1.442695, %v961_v39  ;;  %983 = vadd.xlane.f32.xlu0 %v982_v40 }
 0x2e5   :  { %v1096_v44 = vpop.permute.xlu0 %1095  ;;  %v1020_v45 = vpop.permute.xlu1 %1019 }
 0x2e6   :  { %v5835_v46 = vpop.eup %5409  ;;  %5417 = vpow2.f32 %v977_v41  ;;  %5218 = vmatpush3.msra.mxu0 %v1020_v45  ;;  %5223 = vmatpush3.msra.mxu1 %v1096_v44  ;;  %v5889_v45 = vld [vmem:[#allocation7 + $0x38] sm:$0xff] }
 0x2e7   :  { %5419 = vpow2.f32 %v975_v42  ;;  %v991_v47 = vsel %vm188_vm2, %v5835_v46, 0.0  ;;  %5232 = vmatprep.subr.mxu1 %v5622_v6  ;;  %5227 = vmatprep.subr.mxu0 %v5622_v6  ;;  %v5412_v48 = vpop.eup %5411 }
 0x2e8   :  { %992 = vadd.xlane.f32.xlu1 %v991_v47  ;;  %5421 = vpow2.f32 %v967_v43  ;;  %v979_v50 = vsel %vm188_vm2, %v5412_v48, 0.0 }
 0x2e9   :  { %v1172_v60 = vpop.permute.xlu1 %1171  ;;  %v1341_v62 = vpop.permute.xlu0 %1340 }
 0x2eb   :  { %v5414_v49 = vpop.eup %5413 }
 0x2ec   :  { %980 = vadd.xlane.f32.xlu1 %v979_v50  ;;  %v988_v51 = vsel %vm188_vm2, %v5414_v49, 0.0 }
 0x2ed   :  { %989 = vadd.xlane.f32.xlu0 %v988_v51  ;;  %v1248_v61 = vpop.permute.xlu1 %1247  ;;  %v5901_v51 = vld [vmem:[#allocation7 + $0x8] sm:$0xff] }
 0x2ef   :  { %v5416_v52 = vpop.eup %5415 }
 0x2f0   :  { %v994_v53 = vsel %vm188_vm2, %v5416_v52, 0.0 }
 0x2f1   :  { %995 = vadd.xlane.f32.xlu0 %v994_v53  ;;  %v1417_v63 = vpop.permute.xlu1 %1416 }
 0x2f3   :  { %v5418_v54 = vpop.eup %5417 }
 0x2f4   :  { %v5844_v55 = vpop.eup %5419  ;;  %v1000_v56 = vsel %vm188_vm2, %v5418_v54, 0.0 }
 0x2f5   :  { %1001 = vadd.xlane.f32.xlu0 %v1000_v56  ;;  %v997_v57 = vsel %vm188_vm2, %v5844_v55, 0.0  ;;  %v5422_v58 = vpop.eup %5421 }
 0x2f6   :  { %998 = vadd.xlane.f32.xlu1 %v997_v57  ;;  %v985_v59 = vsel %vm188_vm2, %v5422_v58, 0.0 }
 0x2fa   :  { %986 = vadd.xlane.f32.xlu1 %v985_v59 }
 0x30b   :  { %1568 = vrot.lane.b32.xlu1 %v5724_v7, %s5634_s30  ;;  %1492 = vrot.lane.b32.xlu0 %v5724_v7, %s5632_s28 }
 0x30f   :  { %1673 = vrot.lane.b32.xlu0 %v5694_v0, %s5635_s6  ;;  %1671 = vrot.lane.b32.xlu1 %v5696_v1, %s5635_s6 }
 0x313   :  { %1669 = vrot.lane.b32.xlu1 %v5702_v3, %s5635_s6 }
 0x36d   :  { %v984_v9 = vpop.xlane.xlu0 %983 }
 0x36e   :  { %5423 = vrcp.f32 %v984_v9 }
 0x371   :  { %v993_v10 = vpop.xlane.xlu1 %992 }
 0x375   :  { %v981_v11 = vpop.xlane.xlu1 %980 }
 0x376   :  { %5425 = vrcp.f32 %v981_v11  ;;  %v990_v7 = vpop.xlane.xlu0 %989 }
 0x377   :  { %5427 = vrcp.f32 %v990_v7 }
 0x37a   :  { %v996_v12 = vpop.xlane.xlu0 %995 }
 0x37b   :  { %v5424_v13 = vpop.eup %5423  ;;  %5429 = vrcp.f32 %v996_v12  ;;  %v5924_v12 = vsub.s32 0, %v5798_v24 }
 0x37c   :  { %v1006_v0 = vmul.f32 %v5424_v13, %v5408_v37  ;;  %v5926_v13 = vld [vmem:[#allocation8] sm:$0xff] }
 0x37e   :  { %5225 = vmatmul.mubr.msk.f32.vlgmr.msra.gmra.mxu1 %vm188_vm2, %v1006_v0  ;;  %v1002_v1 = vpop.xlane.xlu0 %1001  ;;  %v1662_v0 = vrot.slane %v5926_v13, %v5924_v12 }
 0x37f   :  { %5431 = vrcp.f32 %v1002_v1  ;;  %5233 = vmatpush3.msra.mxu1 %v1248_v61  ;;  %v999_v3 = vpop.xlane.xlu1 %998  ;;  %5234 = vmatprep.mubr.msk.f32.mxu1 %vm5623_vm1, %v5622_v6 }
 0x380   :  { %5242 = vmatprep.subr.mxu1 %v5622_v6 }
 0x382   :  { %v1493_v8 = vpop.permute.xlu0 %1492 }
 0x383   :  { %v5426_v14 = vpop.eup %5425  ;;  %v987_v15 = vpop.xlane.xlu1 %986 }
 0x384   :  { %v5428_v16 = vpop.eup %5427  ;;  %5433 = vrcp.f32 %v987_v15  ;;  %v1004_v17 = vmul.f32 %v5426_v14, %v5412_v48  ;;  %v89_v48 = vld [vmem:[#allocation2] sm:$0xff] }
 0x385   :  { %v1010_v18 = vmul.f32 %v5428_v16, %v5414_v49  ;;  %5435 = vrcp.f32 %v993_v10  ;;  %v5895_v49 = vld [vmem:[#allocation7 + $0x18] sm:$0xff] }
 0x386   :  { %5220 = vmatmul.mubr.msk.f32.vlgmr.msra.gmra.mxu0 %vm188_vm2, %v1004_v17  ;;  %5437 = vrcp.f32 %v999_v3  ;;  %v1674_v31 = vpop.permute.xlu0 %1673 }
 0x387   :  { %5228 = vmatpush3.msra.mxu0 %v1172_v60  ;;  %5235 = vmatmul.mubr.msk.f32.vlgmr.msra.gmra.mxu1 %vm188_vm2, %v1010_v18  ;;  %v1569_v21 = vpop.permute.xlu1 %1568 }
 0x388   :  { %v5430_v19 = vpop.eup %5429  ;;  %5243 = vmatpush3.msra.mxu1 %v1417_v63  ;;  %5244 = vmatprep.mubr.msk.f32.mxu1 %vm5623_vm1, %v5622_v6 }
 0x389   :  { %5252 = vmatprep.subr.mxu1 %v5622_v6  ;;  %v1014_v20 = vmul.f32 %v5430_v19, %v5416_v52  ;;  %5229 = vmatprep.mubr.msk.f32.mxu0 %vm5623_vm1, %v5622_v6 }
 0x38a   :  { %5237 = vmatprep.subr.mxu0 %v5622_v6 }
 0x38b   :  { %5245 = vmatmul.mubr.msk.f32.vlgmr.msra.gmra.mxu1 %vm188_vm2, %v1014_v20  ;;  %v1672_v32 = vpop.permute.xlu1 %1671 }
 0x38c   :  { %v5432_v22 = vpop.eup %5431  ;;  %5253 = vmatpush3.msra.mxu1 %v1569_v21  ;;  %5254 = vmatprep.mubr.msk.f32.mxu1 %vm5623_vm1, %v5622_v6 }
 0x38d   :  { %v1018_v23 = vmul.f32 %v5432_v22, %v5418_v54  ;;  %5268 = vmatprep.subr.mxu1 %v5889_v45  ;;  %v90_v54 = vld [vmem:[#allocation2 + $0x8] sm:$0xff] }
 0x38f   :  { %5255 = vmatmul.mubr.msk.f32.vlgmr.msra.gmra.mxu1 %vm188_vm2, %v1018_v23  ;;  %v1670_v33 = vpop.permute.xlu1 %1669 }
 0x390   :  { %5269 = vmatpush3.msra.mxu1 %v5889_v45  ;;  %5276 = vmatprep.mubr.msk.f32.mxu1 %vm103_vm0, %v89_v48 }
 0x391   :  { %v5434_v25 = vpop.eup %5433 }
 0x392   :  { %v1008_v26 = vmul.f32 %v5434_v25, %v5422_v58  ;;  %v5436_v27 = vpop.eup %5435 }
 0x393   :  { %v1012_v28 = vmul.f32 %v5436_v27, %v5835_v46  ;;  %v5438_v29 = vpop.eup %5437  ;;  %v5891_v46 = vld [vmem:[#allocation7 + $0x28] sm:$0xff] }
 0x394   :  { %5230 = vmatmul.mubr.msk.f32.vlgmr.msra.gmra.mxu0 %vm188_vm2, %v1008_v26  ;;  %v1016_v30 = vmul.f32 %v5438_v29, %v5844_v55  ;;  %5270 = vmatprep.subr.mxu1 %v5891_v46 }
 0x395   :  { %5238 = vmatpush3.msra.mxu0 %v1341_v62  ;;  %5239 = vmatprep.mubr.msk.f32.mxu0 %vm5623_vm1, %v5622_v6 }
 0x396   :  { %5247 = vmatprep.subr.mxu0 %v5622_v6  ;;  %5271 = vmatpush3.msra.mxu1 %v5891_v46 }
 0x397   :  { %5272 = vmatprep.subr.mxu1 %v5895_v49 }
 0x398   :  { %5240 = vmatmul.mubr.msk.f32.vlgmr.msra.gmra.mxu0 %vm188_vm2, %v1012_v28  ;;  %5273 = vmatpush3.msra.mxu1 %v5895_v49 }
 0x399   :  { %5248 = vmatpush3.msra.mxu0 %v1493_v8  ;;  %5249 = vmatprep.mubr.msk.f32.mxu0 %vm5623_vm1, %v5622_v6 }
 0x39a   :  { %5257 = vmatprep.subr.mxu0 %v1674_v31  ;;  %5274 = vmatprep.subr.mxu1 %v5901_v51 }
 0x39b   :  { %5275 = vmatpush3.msra.mxu1 %v5901_v51 }
 0x39c   :  { %5250 = vmatmul.mubr.msk.f32.vlgmr.msra.gmra.mxu0 %vm188_vm2, %v1016_v30  ;;  %5277 = vmatmul.mubr.msk.f32.vlgmr.msra.gmra.mxu1 %vm103_vm0, %v90_v54 }
 0x39d   :  { %5258 = vmatpush3.msra.mxu0 %v1674_v31  ;;  %5290 = vmatprep.subr.mxu1 %v5622_v6 }
 0x39e   :  { %5259 = vmatprep.subr.mxu0 %v1672_v32  ;;  %5292 = vmatprep.mubr.msk.f32.mxu1 %vm5623_vm1, %v5622_v6 }
 0x39f   :  { %5260 = vmatpush3.msra.mxu0 %v1672_v32 }
 0x3a0   :  { %5261 = vmatprep.subr.mxu0 %v1670_v33 }
 0x3a1   :  { %5262 = vmatpush3.msra.mxu0 %v1670_v33 }
 0x43e   :  { %v1167_v34 = vpop.f32.mrf.mxu1 }
 0x43f   :  { %1324 = vrot.lane.b32.xlu0 %v1167_v34, %s5615_s24 }
 0x440   :  { %v5226_v36 = vpop.f32.mrf.mxu1 }
 0x446   :  { %v1091_v35 = vpop.f32.mrf.mxu0 }
 0x447   :  { %v1319_v37 = vpop.f32.mrf.mxu1 }
 0x448   :  { %v5221_v38 = vpop.f32.mrf.mxu0 }
 0x449   :  { %v5236_v39 = vpop.f32.mrf.mxu1 }
 0x44b   :  { %v1488_v40 = vpop.f32.mrf.mxu1 }
 0x44c   :  { %1645 = vrot.lane.b32.xlu1 %v1488_v40, %s5615_s24 }
 0x44d   :  { %v5246_v41 = vpop.f32.mrf.mxu1 }
 0x44f   :  { %v1640_v42 = vpop.f32.mrf.mxu1 }
 0x451   :  { %v5256_v43 = vpop.f32.mrf.mxu1 }
 0x454   :  { %v1243_v44 = vpop.f32.mrf.mxu0 }
 0x455   :  { %1328 = vrot.lane.b32.xlu0 %v1243_v44, %s5619_s12 }
 0x456   :  { %v5231_v47 = vpop.f32.mrf.mxu0 }
 0x458   :  { %v1412_v50 = vpop.f32.mrf.mxu0 }
 0x459   :  { %1332 = vrot.lane.b32.xlu0 %v1319_v37, %s5636_s7 }
 0x45a   :  { %v5241_v52 = vpop.f32.mrf.mxu0 }
 0x45c   :  { %v1564_v53 = vpop.f32.mrf.mxu0  ;;  %v5934_v20 = vpop.f32.mrf.mxu1 }
 0x45d   :  { %1649 = vrot.lane.b32.xlu1 %v1564_v53, %s5619_s12  ;;  %1667 = vrot.lane.b32.xlu0 %v5708_v4, %s5635_s6  ;;  %v5985_v53 = vsub.s32 1, %v5798_v24 }
 0x45e   :  { %v5251_v55 = vpop.f32.mrf.mxu0  ;;  %v1873_v21 = vpop.f32.mrf.mxu1 }
 0x461   :  { %1653 = vrot.lane.b32.xlu1 %v1640_v42, %s5636_s7 }
 0x4b1   :  { %v1325_v56 = vpop.permute.xlu0 %1324 }
 0x4b2   :  { %v1335_v58 = vsel %vm188_vm2, %v1091_v35, %v1325_v56 }
 0x4be   :  { %v1646_v59 = vpop.permute.xlu1 %1645 }
 0x4bf   :  { %v1656_v9 = vsel %vm188_vm2, %v1412_v50, %v1646_v59 }
 0x4c7   :  { %v1329_v57 = vpop.permute.xlu0 %1328 }
 0x4c8   :  { %v1337_v4 = vsel %vm1336_vm11, %v1335_v58, %v1329_v57  ;;  %v1792_v57 = vrot.slane %v5926_v13, %v5985_v53  ;;  %v5993_v58 = vsub.s32 2, %v5798_v24 }
 0x4cb   :  { %v1333_v60 = vpop.permute.xlu0 %1332 }
 0x4cc   :  { %v1339_v61 = vsel %vm1338_vm12, %v1337_v4, %v1333_v60 }
 0x4cd   :  { %5265 = vmatprep.mubr.msk.f32.mxu0 %vm103_vm0, %v1339_v61 }
 0x4cf   :  { %v1650_v62 = vpop.permute.xlu1 %1649  ;;  %v1668_v63 = vpop.permute.xlu0 %1667 }
 0x4d0   :  { %5263 = vmatprep.subr.mxu0 %v1668_v63  ;;  %v1657_v10 = vsel %vm1336_vm11, %v1656_v9, %v1650_v62  ;;  %v1798_v62 = vrot.slane %v5926_v13, %v5993_v58 }
 0x4d1   :  { %5264 = vmatpush3.msra.mxu0 %v1668_v63 }
 0x4d3   :  { %v1654_v11 = vpop.permute.xlu1 %1653 }
 0x4d4   :  { %v1658_v7 = vsel %vm1338_vm12, %v1657_v10, %v1654_v11 }
 0x4d5   :  { %5266 = vmatmul.mubr.msk.f32.vlgmr.msra.gmra.mxu0 %vm103_vm0, %v1658_v7 }
 0x595   :  { %v5267_v1 = vpop.f32.mrf.mxu0 }
 0x596   :  { %v1757_v3 = vadd.f32 %v5267_v1, %v1662_v0 }
 0x597   :  { %v1751_v14 = vpop.f32.mrf.mxu0 }
 0x598   :  { %v1752_v15 = vadd.f32 %v1751_v14, %v1662_v0  ;;  %v1761_v16 = vadd.f32 %v1757_v3, %v5712_v5 }
 0x59a   :  { %v1765_v17 = vsel %vm103_vm0, %v1761_v16, 0.0  ;;  %v1760_v18 = vadd.f32 %v1752_v15, %v5699_v2 }
 0x59b   :  { %1766 = vadd.xlane.f32.xlu1 %v1765_v17 }
 0x59c   :  { %v1762_v19 = vsel %vm103_vm0, %v1760_v18, 0.0 }
 0x59d   :  { %1763 = vadd.xlane.f32.xlu0 %v1762_v19 }
 0x5ac   :  { %1892 = vrot.lane.b32.xlu1 %v5889_v45, %s5631_s27 }
 0x5b0   :  { %1980 = vrot.lane.b32.xlu1 %v1873_v21, %s5624_s2 }
 0x5b3   :  { %1890 = vrot.lane.b32.xlu0 %v5891_v46, %s5631_s27 }
 0x5b4   :  { %1888 = vrot.lane.b32.xlu1 %v5895_v49, %s5631_s27 }
 0x5b7   :  { %1886 = vrot.lane.b32.xlu0 %v5901_v51, %s5631_s27 }
 0x5b8   :  { %2058 = vrot.lane.b32.xlu1 %v1873_v21, %s5626_s20 }
 0x5bc   :  { %2136 = vrot.lane.b32.xlu1 %v1873_v21, %s5627_s21 }
 0x5c0   :  { %2134 = vrot.lane.b32.xlu1 %v1873_v21, %s5629_s25 }
 0x5c4   :  { %2291 = vrot.lane.b32.xlu1 %v5934_v20, %s5624_s2 }
 0x5c8   :  { %2367 = vrot.lane.b32.xlu1 %v5934_v20, %s5625_s4 }
 0x5cc   :  { %2525 = vrot.lane.b32.xlu1 %v5934_v20, %s5628_s22 }
 0x5d0   :  { %2523 = vrot.lane.b32.xlu1 %v5934_v20, %s5630_s26 }
 0x624   :  { %v1767_v2 = vpop.xlane.xlu1 %1766 }
 0x625   :  { %v1770_v5 = vmul.f32 0.03125, %v1767_v2 }
 0x626   :  { %v1764_v22 = vpop.xlane.xlu0 %1763 }
 0x627   :  { %v1772_v23 = vsub.f32 %v1761_v16, %v1770_v5  ;;  %v1769_v25 = vmul.f32 0.03125, %v1764_v22 }
 0x628   :  { %v1893_v26 = vpop.permute.xlu1 %1892 }
 0x629   :  { %v5956_v27 = vsub.f32 %v1760_v18, %v1769_v25  ;;  %v1774_v28 = vmul.f32 %v1772_v23, %v1772_v23  ;;  %5279 = vmatprep.subr.mxu0 %v1893_v26 }
 0x62a   :  { %5280 = vmatpush3.msra.mxu0 %v1893_v26  ;;  %v1891_v29 = vpop.permute.xlu0 %1890 }
 0x62b   :  { %v1778_v8 = vsel %vm103_vm0, %v1774_v28, 0.0  ;;  %v1773_v30 = vmul.f32 %v5956_v27, %v5956_v27  ;;  %5281 = vmatprep.subr.mxu0 %v1891_v29 }
 0x62c   :  { %1779 = vadd.xlane.f32.xlu0 %v1778_v8  ;;  %v1981_v31 = vpop.permute.xlu1 %1980  ;;  %5282 = vmatpush3.msra.mxu0 %v1891_v29 }
 0x62d   :  { %5291 = vmatpush3.xpose.msk.msra.mxu1 %vm188_vm2, %v1981_v31  ;;  %v1775_v32 = vsel %vm103_vm0, %v1773_v30, 0.0 }
 0x62e   :  { %5295 = vmatprep.subr.mxu1 %v5622_v6  ;;  %v1887_v34 = vpop.permute.xlu0 %1886 }
 0x630   :  { %1776 = vadd.xlane.f32.xlu0 %v1775_v32  ;;  %5293 = vmatmul.mubr.msk.f32.vlgmr.msra.gmra.mxu1 %vm188_vm2, %v1873_v21  ;;  %v1889_v33 = vpop.permute.xlu1 %1888 }
 0x631   :  { %5283 = vmatprep.subr.mxu0 %v1889_v33  ;;  %5297 = vmatprep.mubr.msk.f32.mxu1 %vm5623_vm1, %v5622_v6 }
 0x632   :  { %5284 = vmatpush3.msra.mxu0 %v1889_v33 }
 0x633   :  { %5285 = vmatprep.subr.mxu0 %v1887_v34 }
 0x634   :  { %v2059_v36 = vpop.permute.xlu1 %2058  ;;  %5286 = vmatpush3.msra.mxu0 %v1887_v34 }
 0x635   :  { %5296 = vmatpush3.xpose.msk.msra.mxu1 %vm188_vm2, %v2059_v36  ;;  %5300 = vmatprep.subr.mxu0 %v5622_v6 }
 0x636   :  { %5305 = vmatprep.subr.mxu1 %v5622_v6 }
 0x638   :  { %v2137_v35 = vpop.permute.xlu1 %2136 }
 0x63c   :  { %v2135_v39 = vpop.permute.xlu1 %2134 }
 0x640   :  { %v2292_v47 = vpop.permute.xlu1 %2291 }
 0x644   :  { %v2368_v50 = vpop.permute.xlu1 %2367 }
 0x646   :  { %2056 = vrot.lane.b32.xlu0 %v1873_v21, %s5625_s4 }
 0x648   :  { %v2526_v59 = vpop.permute.xlu1 %2525 }
 0x64a   :  { %2214 = vrot.lane.b32.xlu0 %v1873_v21, %s5628_s22 }
 0x64c   :  { %v2524_v9 = vpop.permute.xlu1 %2523 }
 0x64e   :  { %2212 = vrot.lane.b32.xlu0 %v1873_v21, %s5630_s26 }
 0x652   :  { %2369 = vrot.lane.b32.xlu0 %v5934_v20, %s5626_s20 }
 0x656   :  { %2447 = vrot.lane.b32.xlu0 %v5934_v20, %s5627_s21 }
 0x65a   :  { %2445 = vrot.lane.b32.xlu0 %v5934_v20, %s5629_s25 }
 0x6b5   :  { %v1780_v37 = vpop.xlane.xlu0 %1779 }
 0x6b6   :  { %v1782_v38 = vmul.f32 0.03125, %v1780_v37 }
 0x6b8   :  { %v1784_v40 = vadd.f32 1e-05, %v1782_v38 }
 0x6b9   :  { %v1777_v41 = vpop.xlane.xlu0 %1776 }
 0x6ba   :  { %5439 = vrsqrt.f32 %v1784_v40  ;;  %v1781_v42 = vmul.f32 0.03125, %v1777_v41 }
 0x6bc   :  { %v1783_v43 = vadd.f32 1e-05, %v1781_v42 }
 0x6bd   :  { %v2057_v44 = vpop.permute.xlu0 %2056 }
 0x6be   :  { %5441 = vrsqrt.f32 %v1783_v43  ;;  %5298 = vmatmul.mubr.msk.f32.vlgmr.msra.gmra.mxu1 %vm188_vm2, %v2057_v44 }
 0x6bf   :  { %5307 = vmatprep.mubr.msk.f32.mxu1 %vm5623_vm1, %v5622_v6 }
 0x6c1   :  { %v2215_v48 = vpop.permute.xlu0 %2214 }
 0x6c2   :  { %5306 = vmatpush3.xpose.msk.msra.mxu1 %vm188_vm2, %v2215_v48 }
 0x6c3   :  { %5315 = vmatprep.subr.mxu1 %v5622_v6 }
 0x6c5   :  { %v2213_v52 = vpop.permute.xlu0 %2212 }
 0x6c6   :  { %5308 = vmatmul.mubr.msk.f32.vlgmr.msra.gmra.mxu1 %vm188_vm2, %v2213_v52 }
 0x6c7   :  { %v5440_v54 = vpop.eup %5439  ;;  %5317 = vmatprep.mubr.msk.f32.mxu1 %vm5623_vm1, %v5622_v6 }
 0x6c8   :  { %v1788_v56 = vmul.f32 %v5440_v54, %v1772_v23 }
 0x6c9   :  { %v2370_v55 = vpop.permute.xlu0 %2369 }
 0x6ca   :  { %5316 = vmatpush3.xpose.msk.msra.mxu1 %vm188_vm2, %v2370_v55  ;;  %v1794_v61 = vmul.f32 %v1792_v57, %v1788_v56 }
 0x6cb   :  { %v5442_v4 = vpop.eup %5441  ;;  %5325 = vmatprep.subr.mxu1 %v5622_v6 }
 0x6cc   :  { %v1787_v60 = vmul.f32 %v5442_v4, %v5956_v27  ;;  %v6008_v11 = vadd.f32 %v1798_v62, %v1794_v61 }
 0x6cd   :  { %5318 = vmatmul.mubr.msk.f32.vlgmr.msra.gmra.mxu1 %vm188_vm2, %v2368_v50  ;;  %v2448_v7 = vpop.permute.xlu0 %2447 }
 0x6ce   :  { %5326 = vmatpush3.xpose.msk.msra.mxu1 %vm188_vm2, %v2526_v59  ;;  %5327 = vmatprep.mubr.msk.f32.mxu1 %vm5623_vm1, %v5622_v6  ;;  %v1793_v63 = vmul.f32 %v1792_v57, %v1787_v60 }
 0x6cf   :  { %5335 = vmatprep.subr.mxu1 %v5622_v6 }
 0x6d0   :  { %v6005_v10 = vadd.f32 %v1798_v62, %v1793_v63 }
 0x6d1   :  { %5328 = vmatmul.mubr.msk.f32.vlgmr.msra.gmra.mxu1 %vm188_vm2, %v2524_v9  ;;  %v2446_v0 = vpop.permute.xlu0 %2445 }
 0x6d2   :  { %5287 = vmatprep.mubr.msk.f32.mxu0 %vm103_vm0, %v6005_v10  ;;  %5337 = vmatprep.mubr.msk.f32.mxu1 %vm5623_vm1, %v5622_v6 }
 0x6d3   :  { %5288 = vmatmul.mubr.msk.f32.vlgmr.msra.gmra.mxu0 %vm103_vm0, %v6008_v11 }
 0x6d4   :  { %5301 = vmatpush3.xpose.msk.msra.mxu0 %vm188_vm2, %v2137_v35  ;;  %5302 = vmatprep.mubr.msk.f32.mxu0 %vm5623_vm1, %v5622_v6 }
 0x6d5   :  { %5310 = vmatprep.subr.mxu0 %v5622_v6 }
 0x6d7   :  { %5303 = vmatmul.mubr.msk.f32.vlgmr.msra.gmra.mxu0 %vm188_vm2, %v2135_v39 }
 0x6d8   :  { %5311 = vmatpush3.xpose.msk.msra.mxu0 %vm188_vm2, %v2292_v47  ;;  %5312 = vmatprep.mubr.msk.f32.mxu0 %vm5623_vm1, %v5622_v6 }
 0x6d9   :  { %5320 = vmatprep.subr.mxu0 %v5622_v6 }
 0x6db   :  { %5313 = vmatmul.mubr.msk.f32.vlgmr.msra.gmra.mxu0 %vm188_vm2, %v5934_v20 }
 0x6dc   :  { %5321 = vmatpush3.xpose.msk.msra.mxu0 %vm188_vm2, %v2448_v7  ;;  %5322 = vmatprep.mubr.msk.f32.mxu0 %vm5623_vm1, %v5622_v6 }
 0x6dd   :  { %5330 = vmatprep.subr.mxu0 %v5622_v6 }
 0x6df   :  { %5323 = vmatmul.mubr.msk.f32.vlgmr.msra.gmra.mxu0 %vm188_vm2, %v2446_v0 }
 0x6e0   :  { %5332 = vmatprep.mubr.msk.f32.mxu0 %vm5623_vm1, %v5622_v6 }
 0x6f0   :  { %v2052_v1 = vpop.f32.mrf.mxu1 }
 0x6f1   :  { %v2601_v3 = vsel %vm188_vm2, %v2052_v1, -inf }
 0x6f2   :  { %2602 = vmax.xlane.f32.xlu0 %v2601_v3  ;;  %v5294_v14 = vpop.f32.mrf.mxu1 }
 0x77b   :  { %v2603_v20 = vpop.xlane.xlu0 %2602 }
 0x77c   :  { %v2625_v21 = vsub.f32 %v2052_v1, %v2603_v20 }
 0x77e   :  { %v2130_v15 = vpop.f32.mrf.mxu1  ;;  %v2633_v22 = vmul.f32 1.442695, %v2625_v21 }
 0x77f   :  { %v2604_v16 = vsel %vm188_vm2, %v2130_v15, -inf }
 0x780   :  { %2605 = vmax.xlane.f32.xlu1 %v2604_v16  ;;  %v5299_v17 = vpop.f32.mrf.mxu1  ;;  %5443 = vpow2.f32 %v2633_v22 }
 0x786   :  { %v2286_v18 = vpop.f32.mrf.mxu1 }
 0x787   :  { %v2610_v31 = vsel %vm188_vm2, %v2286_v18, -inf }
 0x788   :  { %v5309_v19 = vpop.f32.mrf.mxu1 }
 0x78d   :  { %v2441_v2 = vpop.f32.mrf.mxu1  ;;  %v6047_v37 = vpop.eup %5443 }
 0x78e   :  { %v2616_v35 = vsel %vm188_vm2, %v2441_v2, -inf  ;;  %v2649_v39 = vsel %vm188_vm2, %v6047_v37, 0.0 }
 0x78f   :  { %v5319_v5 = vpop.f32.mrf.mxu1 }
 0x791   :  { %v2597_v23 = vpop.f32.mrf.mxu1 }
 0x792   :  { %v2622_v40 = vsel %vm188_vm2, %v2597_v23, -inf }
 0x793   :  { %v6036_v25 = vpop.f32.mrf.mxu0  ;;  %v5329_v26 = vpop.f32.mrf.mxu1 }
 0x795   :  { %v6038_v27 = vpop.f32.mrf.mxu0 }
 0x796   :  { %5331 = vmatpush3.msra.mxu0 %v6038_v27 }
 0x797   :  { %v2208_v28 = vpop.f32.mrf.mxu0  ;;  %5340 = vmatprep.subr.mxu0 %v5622_v6 }
 0x798   :  { %v2607_v29 = vsel %vm188_vm2, %v2208_v28, -inf }
 0x799   :  { %2608 = vmax.xlane.f32.xlu0 %v2607_v29  ;;  %v5304_v8 = vpop.f32.mrf.mxu0 }
 0x79b   :  { %v2363_v30 = vpop.f32.mrf.mxu0 }
 0x79c   :  { %v2613_v32 = vsel %vm188_vm2, %v2363_v30, -inf }
 0x79d   :  { %2611 = vmax.xlane.f32.xlu0 %v2610_v31  ;;  %2614 = vmax.xlane.f32.xlu1 %v2613_v32  ;;  %v5314_v33 = vpop.f32.mrf.mxu0 }
 0x79f   :  { %v2519_v34 = vpop.f32.mrf.mxu0 }
 0x7a0   :  { %v2619_v36 = vsel %vm188_vm2, %v2519_v34, -inf }
 0x7a1   :  { %2620 = vmax.xlane.f32.xlu1 %v2619_v36  ;;  %v5324_v38 = vpop.f32.mrf.mxu0  ;;  %2617 = vmax.xlane.f32.xlu0 %v2616_v35 }
 0x7a5   :  { %2650 = vadd.xlane.f32.xlu1 %v2649_v39  ;;  %2623 = vmax.xlane.f32.xlu0 %v2622_v40 }
 0x7b6   :  { %2763 = vrot.lane.b32.xlu1 %v6038_v27, %s5625_s4 }
 0x7ba   :  { %2915 = vrot.lane.b32.xlu1 %v6038_v27, %s5630_s26 }
 0x7be   :  { %3080 = vrot.lane.b32.xlu1 %v6036_v25, %s5625_s4 }
 0x809   :  { %v2606_v41 = vpop.xlane.xlu1 %2605 }
 0x80a   :  { %v2626_v42 = vsub.f32 %v2130_v15, %v2606_v41 }
 0x80c   :  { %v2635_v43 = vmul.f32 1.442695, %v2626_v42 }
 0x80e   :  { %5445 = vpow2.f32 %v2635_v43 }
 0x81b   :  { %v6058_v44 = vpop.eup %5445 }
 0x81c   :  { %v2652_v47 = vsel %vm188_vm2, %v6058_v44, 0.0 }
 0x81d   :  { %2653 = vadd.xlane.f32.xlu0 %v2652_v47 }
 0x822   :  { %v2609_v48 = vpop.xlane.xlu0 %2608 }
 0x823   :  { %v2627_v50 = vsub.f32 %v2208_v28, %v2609_v48 }
 0x825   :  { %v2637_v52 = vmul.f32 1.442695, %v2627_v50 }
 0x826   :  { %v2612_v54 = vpop.xlane.xlu0 %2611  ;;  %v2615_v55 = vpop.xlane.xlu1 %2614 }
 0x827   :  { %5447 = vpow2.f32 %v2637_v52  ;;  %v2628_v56 = vsub.f32 %v2286_v18, %v2612_v54  ;;  %v2629_v57 = vsub.f32 %v2363_v30, %v2615_v55 }
 0x829   :  { %v2639_v59 = vmul.f32 1.442695, %v2628_v56  ;;  %v2641_v4 = vmul.f32 1.442695, %v2629_v57 }
 0x82a   :  { %v2618_v60 = vpop.xlane.xlu0 %2617  ;;  %v2621_v61 = vpop.xlane.xlu1 %2620 }
 0x82b   :  { %5449 = vpow2.f32 %v2639_v59  ;;  %v2630_v62 = vsub.f32 %v2441_v2, %v2618_v60  ;;  %v2631_v63 = vsub.f32 %v2519_v34, %v2621_v61 }
 0x82c   :  { %5451 = vpow2.f32 %v2641_v4 }
 0x82d   :  { %v2643_v9 = vmul.f32 1.442695, %v2630_v62  ;;  %v2645_v7 = vmul.f32 1.442695, %v2631_v63 }
 0x82e   :  { %v2624_v0 = vpop.xlane.xlu0 %2623  ;;  %v2651_v1 = vpop.xlane.xlu1 %2650 }
 0x82f   :  { %5453 = vpow2.f32 %v2643_v9  ;;  %v2632_v3 = vsub.f32 %v2597_v23, %v2624_v0 }
 0x830   :  { %5455 = vpow2.f32 %v2645_v7 }
 0x831   :  { %v2647_v14 = vmul.f32 1.442695, %v2632_v3  ;;  %5457 = vrcp.f32 %v2651_v1 }
 0x832   :  { %v2764_v15 = vpop.permute.xlu1 %2763 }
 0x833   :  { %5459 = vpow2.f32 %v2647_v14  ;;  %5336 = vmatpush3.msra.mxu1 %v2764_v15 }
 0x834   :  { %v5448_v16 = vpop.eup %5447  ;;  %5345 = vmatprep.subr.mxu1 %v5622_v6 }
 0x835   :  { %v2655_v17 = vsel %vm188_vm2, %v5448_v16, 0.0 }
 0x836   :  { %2656 = vadd.xlane.f32.xlu1 %v2655_v17  ;;  %v2916_v32 = vpop.permute.xlu1 %2915 }
 0x838   :  { %v5450_v18 = vpop.eup %5449 }
 0x839   :  { %v5452_v19 = vpop.eup %5451  ;;  %v2658_v20 = vsel %vm188_vm2, %v5450_v18, 0.0 }
 0x83a   :  { %2659 = vadd.xlane.f32.xlu0 %v2658_v20  ;;  %v2661_v21 = vsel %vm188_vm2, %v5452_v19, 0.0 }
 0x83b   :  { %2662 = vadd.xlane.f32.xlu1 %v2661_v21 }
 0x83c   :  { %v5454_v2 = vpop.eup %5453 }
 0x83d   :  { %v6066_v5 = vpop.eup %5455  ;;  %v2664_v22 = vsel %vm188_vm2, %v5454_v2, 0.0 }
 0x83e   :  { %v5458_v23 = vpop.eup %5457  ;;  %2665 = vadd.xlane.f32.xlu0 %v2664_v22  ;;  %v2667_v26 = vsel %vm188_vm2, %v6066_v5, 0.0 }
 0x83f   :  { %2668 = vadd.xlane.f32.xlu1 %v2667_v26  ;;  %v2674_v28 = vmul.f32 %v5458_v23, %v6047_v37 }
 0x840   :  { %v6072_v29 = vpop.eup %5459 }
 0x841   :  { %5333 = vmatmul.mubr.msk.f32.vlgmr.msra.gmra.mxu0 %vm188_vm2, %v2674_v28  ;;  %v2670_v8 = vsel %vm188_vm2, %v6072_v29, 0.0 }
 0x842   :  { %2671 = vadd.xlane.f32.xlu0 %v2670_v8  ;;  %5342 = vmatprep.mubr.msk.f32.mxu0 %vm5623_vm1, %v5622_v6 }
 0x850   :  { %3232 = vrot.lane.b32.xlu1 %v6036_v25, %s5630_s26 }
 0x854   :  { %3331 = vrot.lane.b32.xlu1 %v5891_v46, %s5635_s6  ;;  %v3081_v46 = vpop.permute.xlu1 %3080 }
 0x858   :  { %2839 = vrot.lane.b32.xlu0 %v6038_v27, %s5629_s25  ;;  %3329 = vrot.lane.b32.xlu1 %v5895_v49, %s5635_s6 }
 0x85c   :  { %3156 = vrot.lane.b32.xlu0 %v6036_v25, %s5629_s25 }
 0x860   :  { %3333 = vrot.lane.b32.xlu0 %v5889_v45, %s5635_s6 }
 0x8a6   :  { %v2654_v30 = vpop.xlane.xlu0 %2653 }
 0x8a7   :  { %5461 = vrcp.f32 %v2654_v30 }
 0x8b4   :  { %v5462_v31 = vpop.eup %5461 }
 0x8b5   :  { %v2676_v33 = vmul.f32 %v5462_v31, %v6058_v44 }
 0x8b7   :  { %5338 = vmatmul.mubr.msk.f32.vlgmr.msra.gmra.mxu1 %vm188_vm2, %v2676_v33 }
 0x8b8   :  { %5346 = vmatpush3.msra.mxu1 %v2916_v32  ;;  %5347 = vmatprep.mubr.msk.f32.mxu1 %vm5623_vm1, %v5622_v6  ;;  %v6135_v32 = vsub.s32 3, %v5798_v24 }
 0x8b9   :  { %5355 = vmatprep.subr.mxu1 %v5622_v6 }
 0x8ba   :  { %v3326_v33 = vrot.slane %v5926_v13, %v6135_v32 }
 0x8bf   :  { %v2657_v49 = vpop.xlane.xlu1 %2656 }
 0x8c0   :  { %5463 = vrcp.f32 %v2657_v49 }
 0x8c3   :  { %v2660_v27 = vpop.xlane.xlu0 %2659 }
 0x8c4   :  { %5465 = vrcp.f32 %v2660_v27  ;;  %v2663_v45 = vpop.xlane.xlu1 %2662 }
 0x8c5   :  { %5467 = vrcp.f32 %v2663_v45 }
 0x8c7   :  { %v2666_v34 = vpop.xlane.xlu0 %2665 }
 0x8c8   :  { %5469 = vrcp.f32 %v2666_v34  ;;  %v2669_v36 = vpop.xlane.xlu1 %2668 }
 0x8c9   :  { %5471 = vrcp.f32 %v2669_v36 }
 0x8cb   :  { %v2672_v35 = vpop.xlane.xlu0 %2671 }
 0x8cc   :  { %5473 = vrcp.f32 %v2672_v35  ;;  %v3233_v52 = vpop.permute.xlu1 %3232 }
 0x8cd   :  { %v5464_v37 = vpop.eup %5463 }
 0x8ce   :  { %v2678_v38 = vmul.f32 %v5464_v37, %v5448_v16 }
 0x8cf   :  { %v2840_v39 = vpop.permute.xlu0 %2839 }
 0x8d0   :  { %5341 = vmatpush3.msra.mxu0 %v2840_v39  ;;  %v3332_v4 = vpop.permute.xlu1 %3331 }
 0x8d1   :  { %v5466_v40 = vpop.eup %5465  ;;  %5343 = vmatmul.mubr.msk.f32.vlgmr.msra.gmra.mxu0 %vm188_vm2, %v2678_v38  ;;  %5350 = vmatprep.subr.mxu0 %v5622_v6 }
 0x8d2   :  { %v5468_v41 = vpop.eup %5467  ;;  %5351 = vmatpush3.msra.mxu0 %v6036_v25  ;;  %v2680_v42 = vmul.f32 %v5466_v40, %v5450_v18  ;;  %5352 = vmatprep.mubr.msk.f32.mxu0 %vm5623_vm1, %v5622_v6 }
 0x8d3   :  { %v3157_v43 = vpop.permute.xlu0 %3156  ;;  %5360 = vmatprep.subr.mxu0 %v5622_v6  ;;  %v2682_v44 = vmul.f32 %v5468_v41, %v5452_v19 }
 0x8d4   :  { %5348 = vmatmul.mubr.msk.f32.vlgmr.msra.gmra.mxu1 %vm188_vm2, %v2680_v42  ;;  %v3330_v60 = vpop.permute.xlu1 %3329 }
 0x8d5   :  { %v5470_v47 = vpop.eup %5469  ;;  %5356 = vmatpush3.msra.mxu1 %v3081_v46  ;;  %5353 = vmatmul.mubr.msk.f32.vlgmr.msra.gmra.mxu0 %vm188_vm2, %v2682_v44 }
 0x8d6   :  { %v5472_v48 = vpop.eup %5471  ;;  %5361 = vmatpush3.msra.mxu0 %v3157_v43  ;;  %5357 = vmatprep.mubr.msk.f32.mxu1 %vm5623_vm1, %v5622_v6  ;;  %v2684_v25 = vmul.f32 %v5470_v47, %v5454_v2 }
 0x8d7   :  { %5365 = vmatprep.subr.mxu1 %v5622_v6  ;;  %5362 = vmatprep.mubr.msk.f32.mxu0 %vm5623_vm1, %v5622_v6  ;;  %v2686_v50 = vmul.f32 %v5472_v48, %v6066_v5  ;;  %v3334_v59 = vpop.permute.xlu0 %3333 }
 0x8d8   :  { %5358 = vmatmul.mubr.msk.f32.vlgmr.msra.gmra.mxu1 %vm188_vm2, %v2684_v25  ;;  %5370 = vmatprep.subr.mxu0 %v3334_v59  ;;  %v3511_v25 = vld [vmem:[#allocation10 + $0x198] sm:$0xff] }
 0x8d9   :  { %v5474_v54 = vpop.eup %5473  ;;  %5366 = vmatpush3.msra.mxu1 %v3233_v52  ;;  %5363 = vmatmul.mubr.msk.f32.vlgmr.msra.gmra.mxu0 %vm188_vm2, %v2686_v50  ;;  %v3508_v50 = vld [vmem:[#allocation10 + $0x180] sm:$0xff]  ;;  %v3510_v52 = vld [vmem:[#allocation10 + $0x190] sm:$0xff] }
 0x8da   :  { %5367 = vmatprep.mubr.msk.f32.mxu1 %vm5623_vm1, %v5622_v6  ;;  %v2688_v55 = vmul.f32 %v5474_v54, %v6072_v29  ;;  %5371 = vmatpush3.msra.mxu0 %v3334_v59  ;;  %v3493_v54 = vld [vmem:[#allocation10 + $0x108] sm:$0xff] }
 0x8db   :  { %5372 = vmatprep.subr.mxu0 %v3332_v4  ;;  %v3477_v59 = vld [vmem:[#allocation10 + $0x88] sm:$0xff] }
 0x8dc   :  { %5368 = vmatmul.mubr.msk.f32.vlgmr.msra.gmra.mxu1 %vm188_vm2, %v2688_v55  ;;  %5373 = vmatpush3.msra.mxu0 %v3332_v4  ;;  %v3495_v55 = vld [vmem:[#allocation10 + $0x118] sm:$0xff] }
 0x8dd   :  { %3748 = vmatprep.mubr.f32.mxu1 %v5622_v6  ;;  %5374 = vmatprep.subr.mxu0 %v3330_v60  ;;  %v3479_v4 = vld [vmem:[#allocation10 + $0x98] sm:$0xff] }
 0x8de   :  { %5375 = vmatpush3.msra.mxu0 %v3330_v60  ;;  %v3476_v60 = vld [vmem:[#allocation10 + $0x80] sm:$0xff] }
 0x901   :  { %v2758_v56 = vpop.f32.mrf.mxu0 }
 0x903   :  { %v5334_v57 = vpop.f32.mrf.mxu0 }
 0x904   :  { %v3494_v57 = vld [vmem:[#allocation10 + $0x110] sm:$0xff] }
 0x977   :  { %v2835_v61 = vpop.f32.mrf.mxu1 }
 0x978   :  { %2992 = vrot.lane.b32.xlu0 %v2835_v61, %s5615_s24  ;;  %v3478_v61 = vld [vmem:[#allocation10 + $0x90] sm:$0xff] }
 0x979   :  { %v5339_v62 = vpop.f32.mrf.mxu1 }
 0x97a   :  { %v3461_v62 = vld [vmem:[#allocation10 + $0x8] sm:$0xff] }
 0x991   :  { %v2911_v63 = vpop.f32.mrf.mxu0 }
 0x993   :  { %v5344_v9 = vpop.f32.mrf.mxu0 }
 0x994   :  { %v2987_v7 = vpop.f32.mrf.mxu1  ;;  %v3460_v9 = vld [vmem:[#allocation10] sm:$0xff] }
 0x995   :  { %3000 = vrot.lane.b32.xlu0 %v2987_v7, %s5636_s7  ;;  %v3075_v0 = vpop.f32.mrf.mxu0  ;;  %v3462_v7 = vld [vmem:[#allocation10 + $0x10] sm:$0xff] }
 0x996   :  { %v5349_v1 = vpop.f32.mrf.mxu1 }
 0x997   :  { %v5354_v3 = vpop.f32.mrf.mxu0  ;;  %v3515_v1 = vld [vmem:[#allocation10 + $0x1b8] sm:$0xff] }
 0x998   :  { %v3152_v14 = vpop.f32.mrf.mxu1 }
 0x999   :  { %3309 = vrot.lane.b32.xlu1 %v3152_v14, %s5615_s24  ;;  %2996 = vrot.lane.b32.xlu0 %v2911_v63, %s5619_s12  ;;  %v3228_v15 = vpop.f32.mrf.mxu0  ;;  %v3463_v63 = vld [vmem:[#allocation10 + $0x18] sm:$0xff] }
 0x99a   :  { %v5359_v16 = vpop.f32.mrf.mxu1 }
 0x99b   :  { %v5364_v17 = vpop.f32.mrf.mxu0 }
 0x99c   :  { %v3304_v18 = vpop.f32.mrf.mxu1 }
 0x99d   :  { %3313 = vrot.lane.b32.xlu1 %v3228_v15, %s5619_s12  ;;  %3327 = vrot.lane.b32.xlu0 %v5901_v51, %s5635_s6 }
 0x99e   :  { %v5369_v19 = vpop.f32.mrf.mxu1 }
 0x99f   :  { %v6146_v19 = vsub.s32 4, %v5798_v24 }
 0x9a1   :  { %3317 = vrot.lane.b32.xlu1 %v3304_v18, %s5636_s7 }
 0x9ea   :  { %v2993_v20 = vpop.permute.xlu0 %2992 }
 0x9eb   :  { %v3003_v2 = vsel %vm188_vm2, %v2758_v56, %v2993_v20  ;;  %v3492_v56 = vld [vmem:[#allocation10 + $0x100] sm:$0xff]  ;;  %v6149_v20 = vsub.s32 5, %v5798_v24 }
 0xa07   :  { %v3001_v21 = vpop.permute.xlu0 %3000 }
 0xa0b   :  { %v2997_v5 = vpop.permute.xlu0 %2996  ;;  %v3310_v22 = vpop.permute.xlu1 %3309 }
 0xa0c   :  { %v3004_v23 = vsel %vm1336_vm11, %v3003_v2, %v2997_v5  ;;  %v3320_v51 = vsel %vm188_vm2, %v3075_v0, %v3310_v22  ;;  %v3513_v0 = vld [vmem:[#allocation10 + $0x1a8] sm:$0xff]  ;;  %v3457_v5 = vrot.slane %v5926_v13, %v6149_v20 }
 0xa0d   :  { %v3005_v26 = vsel %vm1338_vm12, %v3004_v23, %v3001_v21  ;;  %v3451_v21 = vrot.slane %v5926_v13, %v6146_v19  ;;  %v3496_v13 = vld [vmem:[#allocation10 + $0x120] sm:$0xff] }
 0xa0e   :  { %5378 = vmatprep.mubr.msk.f32.mxu0 %vm103_vm0, %v3005_v26 }
 0xa0f   :  { %v3314_v28 = vpop.permute.xlu1 %3313  ;;  %v3328_v29 = vpop.permute.xlu0 %3327 }
 0xa10   :  { %5376 = vmatprep.subr.mxu0 %v3328_v29  ;;  %v3321_v8 = vsel %vm1336_vm11, %v3320_v51, %v3314_v28  ;;  %v3512_v51 = vld [vmem:[#allocation10 + $0x1a0] sm:$0xff] }
 0xa11   :  { %5377 = vmatpush3.msra.mxu0 %v3328_v29 }
 0xa12   :  { %3785 = vmatprep.subr.mxu0 %v3511_v25  ;;  %v3487_v25 = vld [vmem:[#allocation10 + $0xd8] sm:$0xff] }
 0xa13   :  { %v3318_v30 = vpop.permute.xlu1 %3317 }
 0xa14   :  { %v3322_v31 = vsel %vm1338_vm12, %v3321_v8, %v3318_v30  ;;  %v3514_v8 = vld [vmem:[#allocation10 + $0x1b0] sm:$0xff]  ;;  %v3497_v30 = vld [vmem:[#allocation10 + $0x128] sm:$0xff] }
 0xa15   :  { %5379 = vmatmul.mubr.msk.f32.vlgmr.msra.gmra.mxu0 %vm103_vm0, %v3322_v31  ;;  %v3499_v31 = vld [vmem:[#allocation10 + $0x138] sm:$0xff] }
 0xa16   :  { %3825 = vmatprep.mubr.f32.mxu0 %v5622_v6  ;;  %3786 = vmatpush1.msra.mxu0 %v3510_v52  ;;  %v3486_v52 = vld [vmem:[#allocation10 + $0xd0] sm:$0xff] }
 0xa17   :  { %3787 = vmatprep.subr.mxu0 %v3495_v55  ;;  %v3471_v55 = vld [vmem:[#allocation10 + $0x58] sm:$0xff] }
 0xa18   :  { %3788 = vmatpush1.msra.mxu0 %v3494_v57  ;;  %v3470_v57 = vld [vmem:[#allocation10 + $0x50] sm:$0xff] }
 0xa19   :  { %3789 = vmatprep.subr.mxu0 %v3479_v4  ;;  %v3523_v4 = vld [vmem:[#allocation10 + $0x1f8] sm:$0xff] }
 0xa1a   :  { %3790 = vmatpush1.msra.mxu0 %v3478_v61  ;;  %v3522_v61 = vld [vmem:[#allocation10 + $0x1f0] sm:$0xff] }
 0xa1b   :  { %3791 = vmatprep.subr.mxu0 %v3463_v63  ;;  %v3507_v63 = vld [vmem:[#allocation10 + $0x178] sm:$0xff] }
 0xa1c   :  { %3792 = vmatpush1.msra.mxu0 %v3462_v7  ;;  %v3506_v7 = vld [vmem:[#allocation10 + $0x170] sm:$0xff] }
 0xa1d   :  { %3939 = vmatprep.subr.mxu0 %v3515_v1  ;;  %v3491_v1 = vld [vmem:[#allocation10 + $0xf8] sm:$0xff] }
 0xad5   :  { %v5380_v46 = vpop.f32.mrf.mxu0 }
 0xad6   :  { %v3417_v49 = vadd.f32 %v5380_v46, %v3326_v33  ;;  %v3498_v46 = vld [vmem:[#allocation10 + $0x130] sm:$0xff] }
 0xad7   :  { %v3411_v27 = vpop.f32.mrf.mxu0 }
 0xad8   :  { %v3421_v45 = vadd.f32 %v3417_v49, %v6008_v11  ;;  %v3412_v34 = vadd.f32 %v3411_v27, %v3326_v33  ;;  %v3481_v27 = vld [vmem:[#allocation10 + $0xa8] sm:$0xff] }
 0xada   :  { %v3420_v36 = vadd.f32 %v3412_v34, %v6005_v10  ;;  %v3425_v35 = vsel %vm103_vm0, %v3421_v45, 0.0  ;;  %v3509_v10 = vld [vmem:[#allocation10 + $0x188] sm:$0xff]  ;;  %v3480_v34 = vld [vmem:[#allocation10 + $0xa0] sm:$0xff] }
 0xadb   :  { %3426 = vadd.xlane.f32.xlu1 %v3425_v35  ;;  %3708 = vmatprep.subr.mxu1 %v3509_v10  ;;  %v3465_v35 = vld [vmem:[#allocation10 + $0x28] sm:$0xff] }
 0xadc   :  { %v3422_v37 = vsel %vm103_vm0, %v3420_v36, 0.0  ;;  %3709 = vmatpush1.msra.mxu1 %v3508_v50  ;;  %v3485_v10 = vld [vmem:[#allocation10 + $0xc8] sm:$0xff]  ;;  %v3484_v50 = vld [vmem:[#allocation10 + $0xc0] sm:$0xff] }
 0xadd   :  { %3423 = vadd.xlane.f32.xlu0 %v3422_v37  ;;  %3710 = vmatprep.subr.mxu1 %v3493_v54  ;;  %v3467_v37 = vld [vmem:[#allocation10 + $0x38] sm:$0xff]  ;;  %v3469_v54 = vld [vmem:[#allocation10 + $0x48] sm:$0xff] }
 0xade   :  { %3711 = vmatpush1.msra.mxu1 %v3492_v56  ;;  %v3468_v56 = vld [vmem:[#allocation10 + $0x40] sm:$0xff] }
 0xadf   :  { %3712 = vmatprep.subr.mxu1 %v3477_v59  ;;  %v3521_v59 = vld [vmem:[#allocation10 + $0x1e8] sm:$0xff] }
 0xae0   :  { %3713 = vmatpush1.msra.mxu1 %v3476_v60  ;;  %v3520_v60 = vld [vmem:[#allocation10 + $0x1e0] sm:$0xff] }
 0xae1   :  { %3714 = vmatprep.subr.mxu1 %v3461_v62  ;;  %v3505_v62 = vld [vmem:[#allocation10 + $0x168] sm:$0xff] }
 0xae2   :  { %3715 = vmatpush1.msra.mxu1 %v3460_v9  ;;  %v3504_v9 = vld [vmem:[#allocation10 + $0x160] sm:$0xff] }
 0xae3   :  { %3862 = vmatprep.subr.mxu1 %v3513_v0  ;;  %v3489_v0 = vld [vmem:[#allocation10 + $0xe8] sm:$0xff] }
 0xb64   :  { %v3427_v38 = vpop.xlane.xlu1 %3426 }
 0xb65   :  { %v3429_v39 = vmul.f32 0.03125, %v3427_v38  ;;  %v3464_v38 = vld [vmem:[#allocation10 + $0x20] sm:$0xff] }
 0xb66   :  { %v3424_v40 = vpop.xlane.xlu0 %3423 }
 0xb67   :  { %v3428_v41 = vmul.f32 0.03125, %v3424_v40  ;;  %v3431_v42 = vsub.f32 %v3421_v45, %v3429_v39  ;;  %v3483_v45 = vld [vmem:[#allocation10 + $0xb8] sm:$0xff]  ;;  %v3466_v39 = vld [vmem:[#allocation10 + $0x30] sm:$0xff]  ;;  %v3517_v40 = vld [vmem:[#allocation10 + $0x1c8] sm:$0xff] }
 0xb69   :  { %v3430_v43 = vsub.f32 %v3420_v36, %v3428_v41  ;;  %v3433_v48 = vmul.f32 %v3431_v42, %v3431_v42  ;;  %v3482_v36 = vld [vmem:[#allocation10 + $0xb0] sm:$0xff]  ;;  %v3519_v41 = vld [vmem:[#allocation10 + $0x1d8] sm:$0xff] }
 0xb6b   :  { %v3432_v44 = vmul.f32 %v3430_v43, %v3430_v43  ;;  %v3437_v11 = vsel %vm103_vm0, %v3433_v48, 0.0  ;;  %v3500_v48 = vld [vmem:[#allocation10 + $0x140] sm:$0xff] }
 0xb6d   :  { %v3434_v47 = vsel %vm103_vm0, %v3432_v44, 0.0  ;;  %v3501_v44 = vld [vmem:[#allocation10 + $0x148] sm:$0xff] }
 0xb6e   :  { %3435 = vadd.xlane.f32.xlu0 %v3434_v47  ;;  %v3503_v47 = vld [vmem:[#allocation10 + $0x158] sm:$0xff] }
 0xb72   :  { %3438 = vadd.xlane.f32.xlu0 %v3437_v11  ;;  %v3502_v11 = vld [vmem:[#allocation10 + $0x150] sm:$0xff] }
 0xbf7   :  { %v3436_v3 = vpop.xlane.xlu0 %3435 }
 0xbf8   :  { %v3440_v14 = vmul.f32 0.03125, %v3436_v3  ;;  %v3488_v3 = vld [vmem:[#allocation10 + $0xe0] sm:$0xff] }
 0xbfa   :  { %v3442_v15 = vadd.f32 1e-05, %v3440_v14  ;;  %v3490_v14 = vld [vmem:[#allocation10 + $0xf0] sm:$0xff] }
 0xbfb   :  { %v3439_v16 = vpop.xlane.xlu0 %3438 }
 0xbfc   :  { %5475 = vrsqrt.f32 %v3442_v15  ;;  %v3441_v17 = vmul.f32 0.03125, %v3439_v16  ;;  %v3473_v15 = vld [vmem:[#allocation10 + $0x68] sm:$0xff]  ;;  %v3475_v16 = vld [vmem:[#allocation10 + $0x78] sm:$0xff] }
 0xbfe   :  { %v3443_v18 = vadd.f32 1e-05, %v3441_v17  ;;  %v3472_v17 = vld [vmem:[#allocation10 + $0x60] sm:$0xff] }
 0xc00   :  { %5477 = vrsqrt.f32 %v3443_v18  ;;  %v3474_v18 = vld [vmem:[#allocation10 + $0x70] sm:$0xff] }
 0xc09   :  { %v5476_v2 = vpop.eup %5475 }
 0xc0a   :  { %v3446_v22 = vmul.f32 %v5476_v2, %v3430_v43  ;;  %v3518_v43 = vld [vmem:[#allocation10 + $0x1d0] sm:$0xff]  ;;  %v3575_v2 = vld [vmem:[#allocation10 + $0x398] sm:$0xff] }
 0xc0c   :  { %v3452_v23 = vmul.f32 %v3451_v21, %v3446_v22  ;;  %v3574_v22 = vld [vmem:[#allocation10 + $0x390] sm:$0xff] }
 0xc0d   :  { %v5478_v26 = vpop.eup %5477 }
 0xc0e   :  { %v6155_v28 = vadd.f32 %v3457_v5, %v3452_v23  ;;  %v3447_v29 = vmul.f32 %v5478_v26, %v3431_v42  ;;  %v3516_v42 = vld [vmem:[#allocation10 + $0x1c0] sm:$0xff]  ;;  %v3557_v23 = vld [vmem:[#allocation10 + $0x308] sm:$0xff]  ;;  %v3559_v26 = vld [vmem:[#allocation10 + $0x318] sm:$0xff] }
 0xc10   :  { %v3453_v33 = vmul.f32 %v3451_v21, %v3447_v29  ;;  %5055 = vmatmul.mubr.msk.f32.vlgmr.msra.gmra.mxu1 %vm103_vm0, %v6155_v28  ;;  %5057 = vmatmul.mubr.msk.f32.vlgmr.msra.gmra.mxu0 %vm103_vm0, %v6155_v28  ;;  %v3573_v21 = vld [vmem:[#allocation10 + $0x388] sm:$0xff]  ;;  %v3556_v29 = vld [vmem:[#allocation10 + $0x300] sm:$0xff] }
 0xc11   :  { %3863 = vmatpush1.msra.mxu1 %v3512_v51  ;;  %3940 = vmatpush1.msra.mxu0 %v3514_v8  ;;  %v3558_v51 = vld [vmem:[#allocation10 + $0x310] sm:$0xff]  ;;  %v3541_v8 = vld [vmem:[#allocation10 + $0x288] sm:$0xff] }
 0xc12   :  { %v6161_v49 = vadd.f32 %v3457_v5, %v3453_v33  ;;  %3864 = vmatprep.subr.mxu1 %v3497_v30  ;;  %3941 = vmatprep.subr.mxu0 %v3499_v31  ;;  %v3572_v5 = vld [vmem:[#allocation10 + $0x380] sm:$0xff]  ;;  %v3543_v30 = vld [vmem:[#allocation10 + $0x298] sm:$0xff]  ;;  %v3542_v31 = vld [vmem:[#allocation10 + $0x290] sm:$0xff] }
 0xc13   :  { %3754 = vmatprep.mubr.f32.mxu1 %v5622_v6  ;;  %3831 = vmatprep.mubr.f32.mxu0 %v5622_v6  ;;  %v3525_v33 = vld [vmem:[#allocation10 + $0x208] sm:$0xff] }
 0xc14   :  { %3865 = vmatpush1.msra.mxu1 %v3496_v13  ;;  %3942 = vmatpush1.msra.mxu0 %v3498_v46  ;;  %v3527_v13 = vld [vmem:[#allocation10 + $0x218] sm:$0xff]  ;;  %v3524_v46 = vld [vmem:[#allocation10 + $0x200] sm:$0xff] }
 0xc15   :  { %5056 = vmatmul.mubr.msk.f32.gmra.mxu1 %vm103_vm0, %v6161_v49  ;;  %5058 = vmatmul.mubr.msk.f32.gmra.mxu0 %vm103_vm0, %v6161_v49 }
 0xc16   :  { %3866 = vmatprep.subr.mxu1 %v3481_v27  ;;  %3943 = vmatprep.subr.mxu0 %v3483_v45  ;;  %v3526_v27 = vld [vmem:[#allocation10 + $0x210] sm:$0xff]  ;;  %v3577_v45 = vld [vmem:[#allocation10 + $0x3a8] sm:$0xff] }
 0xc17   :  { %3867 = vmatpush1.msra.mxu1 %v3480_v34  ;;  %3944 = vmatpush1.msra.mxu0 %v3482_v36  ;;  %v3579_v34 = vld [vmem:[#allocation10 + $0x3b8] sm:$0xff] }
 0xc18   :  { %3868 = vmatprep.subr.mxu1 %v3465_v35  ;;  %3945 = vmatprep.subr.mxu0 %v3467_v37  ;;  %v3589_v36 = vld [vmem:[#allocation10 + $0x400] ss:$8 sm:$0xf] }
 0xc19   :  { %3869 = vmatpush1.msra.mxu1 %v3464_v38  ;;  %3902 = vmatprep.mubr.f32.mxu1 %v5622_v6  ;;  %v3590_v35 = vld [vmem:[#allocation10 + $0x400] ss:$8 sm:$0xf0] }
 0xc1a   :  { %3946 = vmatpush1.msra.mxu0 %v3466_v39  ;;  %3979 = vmatprep.mubr.f32.mxu0 %v5622_v6  ;;  %v6205_v37 = vor.u32 %v3590_v35, %v3589_v36 }
 0xc1b   :  { %5059 = vmatmul.mubr.msk.f32.vlgmr.msra.gmra.mxu1 %vm103_vm0, %v6155_v28  ;;  %5061 = vmatmul.mubr.msk.f32.vlgmr.msra.gmra.mxu0 %vm103_vm0, %v6155_v28 }
 0xc1c   :  { %4016 = vmatprep.subr.mxu1 %v3517_v40  ;;  %4093 = vmatprep.subr.mxu0 %v3519_v41  ;;  %v3601_v38 = vrot.slane %v6205_v37, %v5924_v12  ;;  %v3609_v39 = vrot.slane %v6205_v37, %v5993_v58  ;;  %v3605_v40 = vrot.slane %v6205_v37, %v5985_v53 }
 0xc1d   :  { %4017 = vmatpush1.msra.mxu1 %v3516_v42  ;;  %4094 = vmatpush1.msra.mxu0 %v3518_v43  ;;  %v3613_v41 = vrot.slane %v6205_v37, %v6135_v32 }
 0xc1e   :  { %4018 = vmatprep.subr.mxu1 %v3501_v44  ;;  %4095 = vmatprep.subr.mxu0 %v3503_v47 }
 0xc1f   :  { %3908 = vmatprep.mubr.f32.mxu1 %v5622_v6  ;;  %3985 = vmatprep.mubr.f32.mxu0 %v5622_v6 }
 0xc20   :  { %4019 = vmatpush1.msra.mxu1 %v3500_v48  ;;  %4096 = vmatpush1.msra.mxu0 %v3502_v11 }
 0xc21   :  { %5060 = vmatmul.mubr.msk.f32.gmra.mxu1 %vm103_vm0, %v6161_v49  ;;  %5062 = vmatmul.mubr.msk.f32.gmra.mxu0 %vm103_vm0, %v6161_v49 }
 0xc22   :  { %4020 = vmatprep.subr.mxu1 %v3485_v10  ;;  %4097 = vmatprep.subr.mxu0 %v3487_v25 }
 0xc23   :  { %4021 = vmatpush1.msra.mxu1 %v3484_v50  ;;  %4098 = vmatpush1.msra.mxu0 %v3486_v52 }
 0xc24   :  { %4022 = vmatprep.subr.mxu1 %v3469_v54  ;;  %4099 = vmatprep.subr.mxu0 %v3471_v55 }
 0xc25   :  { %4023 = vmatpush1.msra.mxu1 %v3468_v56  ;;  %4056 = vmatprep.mubr.f32.mxu1 %v5622_v6 }
 0xc26   :  { %4100 = vmatpush1.msra.mxu0 %v3470_v57  ;;  %4133 = vmatprep.mubr.f32.mxu0 %v5622_v6 }
 0xc27   :  { %5063 = vmatmul.mubr.msk.f32.vlgmr.msra.gmra.mxu1 %vm103_vm0, %v6155_v28  ;;  %5065 = vmatmul.mubr.msk.f32.vlgmr.msra.gmra.mxu0 %vm103_vm0, %v6155_v28 }
 0xc28   :  { %4170 = vmatprep.subr.mxu1 %v3521_v59  ;;  %4247 = vmatprep.subr.mxu0 %v3523_v4  ;;  %v3576_v59 = vld [vmem:[#allocation10 + $0x3a0] sm:$0xff]  ;;  %v3578_v4 = vld [vmem:[#allocation10 + $0x3b0] sm:$0xff] }
 0xc29   :  { %4171 = vmatpush1.msra.mxu1 %v3520_v60  ;;  %4248 = vmatpush1.msra.mxu0 %v3522_v61  ;;  %v6216_v60 = vsub.s32 7, %v5798_v24 }
 0xc2a   :  { %4172 = vmatprep.subr.mxu1 %v3505_v62  ;;  %4249 = vmatprep.subr.mxu0 %v3507_v63 }
 0xc2b   :  { %4062 = vmatprep.mubr.f32.mxu1 %v5622_v6  ;;  %4139 = vmatprep.mubr.f32.mxu0 %v5622_v6 }
 0xc2c   :  { %4173 = vmatpush1.msra.mxu1 %v3504_v9  ;;  %4250 = vmatpush1.msra.mxu0 %v3506_v7  ;;  %v3561_v7 = vld [vmem:[#allocation10 + $0x328] sm:$0xff] }
 0xc2d   :  { %5064 = vmatmul.mubr.msk.f32.gmra.mxu1 %vm103_vm0, %v6161_v49  ;;  %5066 = vmatmul.mubr.msk.f32.gmra.mxu0 %vm103_vm0, %v6161_v49 }
 0xc2e   :  { %4174 = vmatprep.subr.mxu1 %v3489_v0  ;;  %4251 = vmatprep.subr.mxu0 %v3491_v1  ;;  %v3563_v0 = vld [vmem:[#allocation10 + $0x338] sm:$0xff] }
 0xc2f   :  { %4175 = vmatpush1.msra.mxu1 %v3488_v3  ;;  %4252 = vmatpush1.msra.mxu0 %v3490_v14 }
 0xc30   :  { %4176 = vmatprep.subr.mxu1 %v3473_v15  ;;  %4253 = vmatprep.subr.mxu0 %v3475_v16  ;;  %v3621_v16 = vrot.slane %v6205_v37, %v6149_v20 }
 0xc31   :  { %4177 = vmatpush1.msra.mxu1 %v3472_v17  ;;  %4210 = vmatprep.mubr.f32.mxu1 %v5622_v6  ;;  %v3629_v17 = vrot.slane %v6205_v37, %v6216_v60 }
 0xc32   :  { %4254 = vmatpush1.msra.mxu0 %v3474_v18  ;;  %4287 = vmatprep.mubr.f32.mxu0 %v5622_v6 }
 0xc33   :  { %5067 = vmatmul.mubr.msk.f32.vlgmr.msra.gmra.mxu1 %vm103_vm0, %v6155_v28  ;;  %5069 = vmatmul.mubr.msk.f32.vlgmr.msra.gmra.mxu0 %vm103_vm0, %v6155_v28 }
 0xc34   :  { %4216 = vmatprep.mubr.f32.mxu1 %v5622_v6  ;;  %4293 = vmatprep.mubr.f32.mxu0 %v5622_v6  ;;  %v3540_v6 = vld [vmem:[#allocation10 + $0x280] sm:$0xff] }
 0xc35   :  { %4360 = vmatprep.subr.mxu1 %v3573_v21  ;;  %4435 = vmatprep.subr.mxu0 %v3575_v2 }
 0xc36   :  { %4361 = vmatpush1.xpose.msra.mxu1 %v3572_v5  ;;  %4436 = vmatpush1.xpose.msra.mxu0 %v3574_v22  ;;  %v3560_v22 = vld [vmem:[#allocation10 + $0x320] sm:$0xff] }
 0xc37   :  { %5068 = vmatmul.mubr.msk.f32.gmra.mxu1 %vm103_vm0, %v6161_v49  ;;  %5070 = vmatmul.mubr.msk.f32.gmra.mxu0 %vm103_vm0, %v6161_v49 }
 0xc38   :  { %4362 = vmatprep.subr.mxu1 %v3557_v23  ;;  %4437 = vmatprep.subr.mxu0 %v3559_v26  ;;  %v3562_v23 = vld [vmem:[#allocation10 + $0x330] sm:$0xff]  ;;  %v6223_v26 = vsub.s32 6, %v5798_v24 }
 0xc3a   :  { %4363 = vmatpush1.xpose.msra.mxu1 %v3556_v29  ;;  %4438 = vmatpush1.xpose.msra.mxu0 %v3558_v51  ;;  %v3545_v29 = vld [vmem:[#allocation10 + $0x2a8] sm:$0xff]  ;;  %v3547_v51 = vld [vmem:[#allocation10 + $0x2b8] sm:$0xff]  ;;  %v3625_v24 = vrot.slane %v6205_v37, %v6223_v26 }
 0xc3b   :  { %4364 = vmatprep.subr.mxu1 %v3541_v8  ;;  %4439 = vmatprep.subr.mxu0 %v3543_v30 }
 0xc3e   :  { %4365 = vmatpush1.xpose.msra.mxu1 %v3540_v6  ;;  %4440 = vmatpush1.xpose.msra.mxu0 %v3542_v31 }
 0xc3f   :  { %4366 = vmatprep.subr.mxu1 %v3525_v33  ;;  %4441 = vmatprep.subr.mxu0 %v3527_v13  ;;  %v3593_v33 = vld [vmem:[#allocation10 + $0x440] ss:$8 sm:$0xf]  ;;  %v3617_v13 = vrot.slane %v6205_v37, %v6146_v19 }
 0xc40   :  { %v3528_v37 = vld [vmem:[#allocation10 + $0x220] sm:$0xff] }
 0xc42   :  { %4367 = vmatpush1.xpose.msra.mxu1 %v3524_v46  ;;  %4442 = vmatpush1.xpose.msra.mxu0 %v3526_v27 }
 0xc43   :  { %4510 = vmatprep.subr.mxu1 %v3577_v45  ;;  %4585 = vmatprep.subr.mxu0 %v3579_v34  ;;  %v3544_v45 = vld [vmem:[#allocation10 + $0x2a0] sm:$0xff]  ;;  %v3546_v34 = vld [vmem:[#allocation10 + $0x2b0] sm:$0xff] }
 0xcd0   :  { %v3750_v42 = vpop.f32.mrf.mxu1  ;;  %v3827_v43 = vpop.f32.mrf.mxu0 }
 0xcd1   :  { %v3751_v44 = vadd.f32 %v3750_v42, %v3601_v38  ;;  %v3828_v47 = vadd.f32 %v3827_v43, %v3609_v39 }
 0xcd2   :  { %v3752_v48 = vpop.f32.mrf.mxu1  ;;  %v3829_v11 = vpop.f32.mrf.mxu0 }
 0xcd3   :  { %v3753_v10 = vadd.f32 %v3752_v48, %v3605_v40  ;;  %v3830_v25 = vadd.f32 %v3829_v11, %v3613_v41  ;;  %v4300_v56 = vmax.f32 %v3751_v44, 0.0  ;;  %v4302_v57 = vmax.f32 %v3828_v47, 0.0  ;;  %v3530_v48 = vld [vmem:[#allocation10 + $0x230] sm:$0xff] }
 0xcd5   :  { %v4301_v50 = vmax.f32 %v3753_v10, 0.0  ;;  %v4303_v52 = vmax.f32 %v3830_v25, 0.0  ;;  %v3756_v54 = vpop.f32.mrf.mxu1  ;;  %v3833_v55 = vpop.f32.mrf.mxu0  ;;  %v3581_v25 = vld [vmem:[#allocation10 + $0x3c8] sm:$0xff] }
 0xcd6   :  { %v3757_v61 = vadd.f32 %v3756_v54, %v3601_v38  ;;  %v3834_v62 = vadd.f32 %v3833_v55, %v3609_v39  ;;  %v3594_v38 = vld [vmem:[#allocation10 + $0x440] ss:$8 sm:$0xf0] }
 0xcd7   :  { %v3758_v63 = vpop.f32.mrf.mxu1  ;;  %v3835_v9 = vpop.f32.mrf.mxu0  ;;  %4400 = vmatprep.mubr.f32.mxu1 %v4301_v50  ;;  %4475 = vmatprep.mubr.f32.mxu0 %v4303_v52  ;;  %v3529_v39 = vld [vmem:[#allocation10 + $0x228] sm:$0xff]  ;;  %v6229_v47 = vor.u32 %v3594_v38, %v3593_v33  ;;  %v3583_v50 = vld [vmem:[#allocation10 + $0x3d8] sm:$0xff]  ;;  %v3550_v33 = vld [vmem:[#allocation10 + $0x2d0] sm:$0xff] }
 0xcd8   :  { %v3759_v1 = vadd.f32 %v3758_v63, %v3605_v40  ;;  %v3836_v3 = vadd.f32 %v3835_v9, %v3613_v41  ;;  %4401 = vmatmul.mubr.f32.vlgmr.msra.gmra.mxu1 %v4300_v56  ;;  %4476 = vmatmul.mubr.f32.vlgmr.msra.gmra.mxu0 %v4302_v57  ;;  %v4316_v18 = vmax.f32 %v3757_v61, 0.0  ;;  %v4318_v21 = vmax.f32 %v3834_v62, 0.0  ;;  %v3531_v40 = vld [vmem:[#allocation10 + $0x238] sm:$0xff] }
 0xcd9   :  { %4511 = vmatpush1.xpose.msra.mxu1 %v3576_v59  ;;  %4586 = vmatpush1.xpose.msra.mxu0 %v3578_v4  ;;  %v6233_v52 = vrot.slane %v6229_v47, %v5985_v53  ;;  %v6237_v54 = vrot.slane %v6229_v47, %v6135_v32  ;;  %v3580_v53 = vld [vmem:[#allocation10 + $0x3c0] sm:$0xff]  ;;  %v6253_v38 = vrot.slane %v6229_v47, %v6149_v20 }
 0xcda   :  { %v4317_v14 = vmax.f32 %v3759_v1, 0.0  ;;  %v4319_v15 = vmax.f32 %v3836_v3, 0.0  ;;  %4512 = vmatprep.subr.mxu1 %v3561_v7  ;;  %4587 = vmatprep.subr.mxu0 %v3563_v0  ;;  %v3582_v0 = vld [vmem:[#allocation10 + $0x3d0] sm:$0xff]  ;;  %v3565_v3 = vld [vmem:[#allocation10 + $0x348] sm:$0xff] }
 0xcdb   :  { %v3904_v2 = vpop.f32.mrf.mxu1  ;;  %v3981_v5 = vpop.f32.mrf.mxu0 }
 0xcdc   :  { %4405 = vmatprep.mubr.f32.mxu1 %v4317_v14  ;;  %4480 = vmatprep.mubr.f32.mxu0 %v4319_v15  ;;  %v3905_v43 = vadd.f32 %v3904_v2, %v3617_v13  ;;  %v3982_v44 = vadd.f32 %v3981_v5, %v3625_v24  ;;  %v3567_v14 = vld [vmem:[#allocation10 + $0x358] sm:$0xff]  ;;  %v3564_v5 = vld [vmem:[#allocation10 + $0x340] sm:$0xff] }
 0xcdd   :  { %v3906_v8 = vpop.f32.mrf.mxu1  ;;  %v3983_v30 = vpop.f32.mrf.mxu0  ;;  %4406 = vmatmul.mubr.f32.gmra.mxu1 %v4316_v18  ;;  %4481 = vmatmul.mubr.f32.gmra.mxu0 %v4318_v21 }
 0xcde   :  { %v3907_v6 = vadd.f32 %v3906_v8, %v3621_v16  ;;  %v3984_v31 = vadd.f32 %v3983_v30, %v3629_v17  ;;  %4513 = vmatpush1.xpose.msra.mxu1 %v3560_v22  ;;  %4588 = vmatpush1.xpose.msra.mxu0 %v3562_v23  ;;  %v4304_v57 = vmax.f32 %v3905_v43, 0.0  ;;  %v4306_v59 = vmax.f32 %v3982_v44, 0.0  ;;  %v3566_v22 = vld [vmem:[#allocation10 + $0x350] sm:$0xff]  ;;  %v3549_v23 = vld [vmem:[#allocation10 + $0x2c8] sm:$0xff] }
 0xcdf   :  { %4514 = vmatprep.subr.mxu1 %v3545_v29  ;;  %4589 = vmatprep.subr.mxu0 %v3547_v51  ;;  %v3551_v29 = vld [vmem:[#allocation10 + $0x2d8] sm:$0xff]  ;;  %v3633_v30 = vrot.slane %v6229_v47, %v5924_v12  ;;  %v3532_v12 = vld [vmem:[#allocation10 + $0x240] sm:$0xff] }
 0xce0   :  { %v4305_v46 = vmax.f32 %v3907_v6, 0.0  ;;  %v4307_v27 = vmax.f32 %v3984_v31, 0.0  ;;  %v3641_v6 = vrot.slane %v6229_v47, %v5993_v58  ;;  %v3548_v31 = vld [vmem:[#allocation10 + $0x2c0] sm:$0xff] }
 0xce1   :  { %v3910_v36 = vpop.f32.mrf.mxu1  ;;  %v3987_v35 = vpop.f32.mrf.mxu0 }
 0xce2   :  { %4550 = vmatprep.mubr.f32.mxu1 %v4305_v46  ;;  %4625 = vmatprep.mubr.f32.mxu0 %v4307_v27  ;;  %v3911_v4 = vadd.f32 %v3910_v36, %v3617_v13  ;;  %v3988_v61 = vadd.f32 %v3987_v35, %v3625_v24  ;;  %v3533_v13 = vld [vmem:[#allocation10 + $0x248] sm:$0xff]  ;;  %v3535_v24 = vld [vmem:[#allocation10 + $0x258] sm:$0xff]  ;;  %v3534_v36 = vld [vmem:[#allocation10 + $0x250] sm:$0xff] }
 0xce3   :  { %v3912_v41 = vpop.f32.mrf.mxu1  ;;  %v3989_v42 = vpop.f32.mrf.mxu0  ;;  %4515 = vmatpush1.xpose.msra.mxu1 %v3544_v45  ;;  %4590 = vmatpush1.xpose.msra.mxu0 %v3546_v34 }
 0xce4   :  { %4516 = vmatprep.subr.mxu1 %v3529_v39  ;;  %4591 = vmatprep.subr.mxu0 %v3531_v40  ;;  %v3913_v11 = vadd.f32 %v3912_v41, %v3621_v16  ;;  %v3990_v10 = vadd.f32 %v3989_v42, %v3629_v17  ;;  %v4320_v15 = vmax.f32 %v3911_v4, 0.0  ;;  %v4322_v16 = vmax.f32 %v3988_v61, 0.0  ;;  %v3585_v40 = vld [vmem:[#allocation10 + $0x3e8] sm:$0xff]  ;;  %v3587_v41 = vld [vmem:[#allocation10 + $0x3f8] sm:$0xff] }
 0xce5   :  { %v6257_v39 = vrot.slane %v6229_v47, %v6216_v60 }
 0xce6   :  { %v4321_v62 = vmax.f32 %v3913_v11, 0.0  ;;  %v4323_v63 = vmax.f32 %v3990_v10, 0.0 }
 0xce7   :  { %v4058_v55 = vpop.f32.mrf.mxu1  ;;  %v4135_v56 = vpop.f32.mrf.mxu0  ;;  %4517 = vmatpush1.xpose.msra.mxu1 %v3528_v37  ;;  %4592 = vmatpush1.xpose.msra.mxu0 %v3530_v48 }
 0xce8   :  { %4660 = vmatprep.subr.mxu1 %v3581_v25  ;;  %4735 = vmatprep.subr.mxu0 %v3583_v50  ;;  %v4059_v45 = vadd.f32 %v4058_v55, %v3633_v30  ;;  %v4136_v34 = vadd.f32 %v4135_v56, %v3641_v6  ;;  %v3569_v55 = vld [vmem:[#allocation10 + $0x368] sm:$0xff]  ;;  %v3571_v56 = vld [vmem:[#allocation10 + $0x378] sm:$0xff] }
 0xce9   :  { %v4060_v9 = vpop.f32.mrf.mxu1  ;;  %v4137_v7 = vpop.f32.mrf.mxu0 }
 0xcea   :  { %v4061_v1 = vadd.f32 %v4060_v9, %v6233_v52  ;;  %v4138_v32 = vadd.f32 %v4137_v7, %v6237_v54  ;;  %4551 = vmatmul.mubr.f32.vlgmr.msra.gmra.mxu1 %v4304_v57  ;;  %4626 = vmatmul.mubr.f32.vlgmr.msra.gmra.mxu0 %v4306_v59  ;;  %v4308_v44 = vmax.f32 %v4059_v45, 0.0  ;;  %v4310_v37 = vmax.f32 %v4136_v34, 0.0  ;;  %v3553_v9 = vld [vmem:[#allocation10 + $0x2e8] sm:$0xff]  ;;  %v3555_v7 = vld [vmem:[#allocation10 + $0x2f8] sm:$0xff] }
 0xceb   :  { %4555 = vmatprep.mubr.f32.mxu1 %v4321_v62  ;;  %4630 = vmatprep.mubr.f32.mxu0 %v4323_v63  ;;  %v3568_v62 = vld [vmem:[#allocation10 + $0x360] sm:$0xff]  ;;  %v3570_v63 = vld [vmem:[#allocation10 + $0x370] sm:$0xff] }
 0xcec   :  { %4661 = vmatpush1.xpose.msra.mxu1 %v3580_v53  ;;  %4736 = vmatpush1.xpose.msra.mxu0 %v3582_v0  ;;  %v4309_v17 = vmax.f32 %v4061_v1, 0.0  ;;  %v4311_v18 = vmax.f32 %v4138_v32, 0.0  ;;  %v3649_v1 = vrot.slane %v6229_v47, %v6146_v19  ;;  %v3657_v32 = vrot.slane %v6229_v47, %v6223_v26  ;;  %v3536_v19 = vld [vmem:[#allocation10 + $0x260] sm:$0xff] }
 0xced   :  { %v4064_v21 = vpop.f32.mrf.mxu1  ;;  %v4141_v2 = vpop.f32.mrf.mxu0  ;;  %4662 = vmatprep.subr.mxu1 %v3565_v3  ;;  %4737 = vmatprep.subr.mxu0 %v3567_v14  ;;  %v3552_v3 = vld [vmem:[#allocation10 + $0x2e0] sm:$0xff]  ;;  %v3554_v14 = vld [vmem:[#allocation10 + $0x2f0] sm:$0xff] }
 0xcee   :  { %4556 = vmatmul.mubr.f32.gmra.mxu1 %v4320_v15  ;;  %4631 = vmatmul.mubr.f32.gmra.mxu0 %v4322_v16  ;;  %v4065_v48 = vadd.f32 %v4064_v21, %v3633_v30  ;;  %v4142_v11 = vadd.f32 %v4141_v2, %v3641_v6  ;;  %v3537_v15 = vld [vmem:[#allocation10 + $0x268] sm:$0xff]  ;;  %v3539_v16 = vld [vmem:[#allocation10 + $0x278] sm:$0xff] }
 0xcef   :  { %v4066_v51 = vpop.f32.mrf.mxu1  ;;  %v4143_v8 = vpop.f32.mrf.mxu0  ;;  %4700 = vmatprep.mubr.f32.mxu1 %v4309_v17  ;;  %4775 = vmatprep.mubr.f32.mxu0 %v4311_v18 }
 0xcf0   :  { %4663 = vmatpush1.xpose.msra.mxu1 %v3564_v5  ;;  %4738 = vmatpush1.xpose.msra.mxu0 %v3566_v22  ;;  %v4067_v58 = vadd.f32 %v4066_v51, %v6233_v52  ;;  %v4144_v35 = vadd.f32 %v4143_v8, %v6237_v54  ;;  %v3584_v52 = vld [vmem:[#allocation10 + $0x3e0] sm:$0xff]  ;;  %v3586_v54 = vld [vmem:[#allocation10 + $0x3f0] sm:$0xff]  ;;  %v4324_v57 = vmax.f32 %v4065_v48, 0.0  ;;  %v4326_v59 = vmax.f32 %v4142_v11, 0.0 }
 0xcf1   :  { %4664 = vmatprep.subr.mxu1 %v3549_v23  ;;  %4739 = vmatprep.subr.mxu0 %v3551_v29  ;;  %v3538_v5 = vld [vmem:[#allocation10 + $0x270] sm:$0xff] }
 0xcf2   :  { %v4325_v10 = vmax.f32 %v4067_v58, 0.0  ;;  %v4327_v25 = vmax.f32 %v4144_v35, 0.0 }
 0xcf3   :  { %v6245_v46 = vpop.f32.mrf.mxu1  ;;  %v6247_v27 = vpop.f32.mrf.mxu0 }
 0xcf4   :  { %4665 = vmatpush1.xpose.msra.mxu1 %v3548_v31  ;;  %4740 = vmatpush1.xpose.msra.mxu0 %v3550_v33  ;;  %v4213_v21 = vadd.f32 %v6245_v46, %v3649_v1  ;;  %v4290_v2 = vadd.f32 %v6247_v27, %v3657_v32 }
 0xcf5   :  { %4666 = vmatprep.subr.mxu1 %v3533_v13  ;;  %4741 = vmatprep.subr.mxu0 %v3535_v24  ;;  %v4214_v42 = vpop.f32.mrf.mxu1  ;;  %v4291_v43 = vpop.f32.mrf.mxu0 }
 0xcf6   :  { %v4215_v20 = vadd.f32 %v4214_v42, %v6253_v38  ;;  %v4292_v50 = vadd.f32 %v4291_v43, %v6257_v39  ;;  %v4312_v23 = vmax.f32 %v4213_v21, 0.0  ;;  %v4314_v29 = vmax.f32 %v4290_v2, 0.0 }
 0xcf7   :  { %v4218_v53 = vpop.f32.mrf.mxu1  ;;  %v4295_v0 = vpop.f32.mrf.mxu0 }
 0xcf8   :  { %4667 = vmatpush1.xpose.msra.mxu1 %v3532_v12  ;;  %4742 = vmatpush1.xpose.msra.mxu0 %v3534_v36  ;;  %v4313_v4 = vmax.f32 %v4215_v20, 0.0  ;;  %v4315_v61 = vmax.f32 %v4292_v50, 0.0  ;;  %v4219_v51 = vadd.f32 %v4218_v53, %v3649_v1  ;;  %v4296_v8 = vadd.f32 %v4295_v0, %v3657_v32 }
 0xcf9   :  { %4810 = vmatprep.subr.mxu1 %v3585_v40  ;;  %4885 = vmatprep.subr.mxu0 %v3587_v41  ;;  %v4220_v17 = vpop.f32.mrf.mxu1  ;;  %v4297_v18 = vpop.f32.mrf.mxu0 }
 0xcfa   :  { %v4221_v47 = vadd.f32 %v4220_v17, %v6253_v38  ;;  %v4298_v22 = vadd.f32 %v4297_v18, %v6257_v39  ;;  %v4328_v31 = vmax.f32 %v4219_v51, 0.0  ;;  %v4330_v33 = vmax.f32 %v4296_v8, 0.0 }
 0xcfb   :  { %4701 = vmatmul.mubr.f32.vlgmr.msra.gmra.mxu1 %v4308_v44  ;;  %4776 = vmatmul.mubr.f32.vlgmr.msra.gmra.mxu0 %v4310_v37  ;;  %v5483_v44 = vld [vmem:[#allocation8] sm:$0xff] }
 0xcfc   :  { %4705 = vmatprep.mubr.f32.mxu1 %v4325_v10  ;;  %4780 = vmatprep.mubr.f32.mxu0 %v4327_v25  ;;  %v4329_v30 = vmax.f32 %v4221_v47, 0.0  ;;  %v4331_v6 = vmax.f32 %v4298_v22, 0.0  ;;  %v4335_v37 = vrot.slane %v5483_v44, %v6223_v26 }
 0xcfd   :  { %4811 = vmatpush1.xpose.msra.mxu1 %v3584_v52  ;;  %4886 = vmatpush1.xpose.msra.mxu0 %v3586_v54 }
 0xcfe   :  { %4812 = vmatprep.subr.mxu1 %v3569_v55  ;;  %4887 = vmatprep.subr.mxu0 %v3571_v56 }
 0xcff   :  { %4706 = vmatmul.mubr.f32.gmra.mxu1 %v4324_v57  ;;  %4781 = vmatmul.mubr.f32.gmra.mxu0 %v4326_v59 }
 0xd00   :  { %4850 = vmatprep.mubr.f32.mxu1 %v4313_v4  ;;  %4925 = vmatprep.mubr.f32.mxu0 %v4315_v61 }
 0xd01   :  { %4813 = vmatpush1.xpose.msra.mxu1 %v3568_v62  ;;  %4888 = vmatpush1.xpose.msra.mxu0 %v3570_v63 }
 0xd02   :  { %4814 = vmatprep.subr.mxu1 %v3553_v9  ;;  %4889 = vmatprep.subr.mxu0 %v3555_v7 }
 0xd05   :  { %4815 = vmatpush1.xpose.msra.mxu1 %v3552_v3  ;;  %4890 = vmatpush1.xpose.msra.mxu0 %v3554_v14 }
 0xd06   :  { %4816 = vmatprep.subr.mxu1 %v3537_v15  ;;  %4891 = vmatprep.subr.mxu0 %v3539_v16 }
 0xd09   :  { %4817 = vmatpush1.xpose.msra.mxu1 %v3536_v19  ;;  %4892 = vmatpush1.xpose.msra.mxu0 %v3538_v5 }
 0xd0c   :  { %4851 = vmatmul.mubr.f32.vlgmr.msra.gmra.mxu1 %v4312_v23  ;;  %4926 = vmatmul.mubr.f32.vlgmr.msra.gmra.mxu0 %v4314_v29 }
 0xd0d   :  { %4855 = vmatprep.mubr.f32.mxu1 %v4329_v30  ;;  %4930 = vmatprep.mubr.f32.mxu0 %v4331_v6 }
 0xd10   :  { %4856 = vmatmul.mubr.f32.gmra.mxu1 %v4328_v31  ;;  %4931 = vmatmul.mubr.f32.gmra.mxu0 %v4330_v33 }
 0xd98   :  { %v4402_v13 = vpop.f32.mrf.mxu1  ;;  %v4477_v24 = vpop.f32.mrf.mxu0 }
 0xd99   :  { %v4403_v48 = vadd.f32 %v4402_v13, %v4335_v37 }
 0xd9a   :  { %v4404_v46 = vpop.f32.mrf.mxu1  ;;  %v4479_v27 = vpop.f32.mrf.mxu0 }
 0xd9b   :  { %v4478_v50 = vadd.f32 %v4477_v24, %v4403_v48 }
 0xd9d   :  { %v4407_v45 = vpop.f32.mrf.mxu1  ;;  %v4482_v34 = vpop.f32.mrf.mxu0 }
 0xd9e   :  { %v4408_v52 = vadd.f32 %v4407_v45, %v4335_v37 }
 0xd9f   :  { %v4409_v12 = vpop.f32.mrf.mxu1  ;;  %v4484_v36 = vpop.f32.mrf.mxu0 }
 0xda0   :  { %v4483_v4 = vadd.f32 %v4482_v34, %v4408_v52  ;;  %v4967_v36 = vrot.slane %v5483_v44, %v6216_v60 }
 0xdaa   :  { %v4552_v58 = vpop.f32.mrf.mxu1  ;;  %v4627_v35 = vpop.f32.mrf.mxu0 }
 0xdab   :  { %v4553_v56 = vadd.f32 %v4552_v58, %v4478_v50 }
 0xdac   :  { %v4554_v38 = vpop.f32.mrf.mxu1  ;;  %v4629_v39 = vpop.f32.mrf.mxu0 }
 0xdad   :  { %v4628_v61 = vadd.f32 %v4627_v35, %v4553_v56  ;;  %v5071_v38 = vld [vmem:[#allocation8 + $0x8] ss:$0 sm:$0xff] }
 0xdae   :  { %v4557_v40 = vpop.f32.mrf.mxu1  ;;  %v4632_v41 = vpop.f32.mrf.mxu0 }
 0xdaf   :  { %v4558_v62 = vadd.f32 %v4557_v40, %v4483_v4 }
 0xdb0   :  { %v4559_v42 = vpop.f32.mrf.mxu1  ;;  %v4634_v43 = vpop.f32.mrf.mxu0 }
 0xdb1   :  { %v4633_v9 = vadd.f32 %v4632_v41, %v4558_v62 }
 0xdbb   :  { %v4702_v11 = vpop.f32.mrf.mxu1  ;;  %v4777_v10 = vpop.f32.mrf.mxu0 }
 0xdbc   :  { %v4703_v63 = vadd.f32 %v4702_v11, %v4628_v61 }
 0xdbd   :  { %v4704_v25 = vpop.f32.mrf.mxu1  ;;  %v4779_v20 = vpop.f32.mrf.mxu0 }
 0xdbe   :  { %v4778_v7 = vadd.f32 %v4777_v10, %v4703_v63 }
 0xdbf   :  { %v4707_v54 = vpop.f32.mrf.mxu1  ;;  %v4782_v55 = vpop.f32.mrf.mxu0 }
 0xdc0   :  { %v4708_v53 = vadd.f32 %v4707_v54, %v4633_v9 }
 0xdc1   :  { %v4709_v57 = vpop.f32.mrf.mxu1  ;;  %v4784_v59 = vpop.f32.mrf.mxu0 }
 0xdc2   :  { %v4783_v14 = vadd.f32 %v4782_v55, %v4708_v53 }
 0xdcc   :  { %v4852_v26 = vpop.f32.mrf.mxu1  ;;  %v4927_v0 = vpop.f32.mrf.mxu0 }
 0xdcd   :  { %v4853_v1 = vadd.f32 %v4852_v26, %v4778_v7 }
 0xdce   :  { %v4854_v32 = vpop.f32.mrf.mxu1  ;;  %v4929_v3 = vpop.f32.mrf.mxu0 }
 0xdcf   :  { %v4928_v15 = vadd.f32 %v4927_v0, %v4853_v1 }
 0xdd0   :  { %v4857_v16 = vpop.f32.mrf.mxu1  ;;  %v4932_v17 = vpop.f32.mrf.mxu0 }
 0xdd1   :  { %v4936_v18 = vadd.f32 %v4928_v15, %v6155_v28  ;;  %v4858_v21 = vadd.f32 %v4857_v16, %v4783_v14 }
 0xdd2   :  { %v4859_v2 = vpop.f32.mrf.mxu1  ;;  %v4934_v19 = vpop.f32.mrf.mxu0 }
 0xdd3   :  { %v4933_v5 = vadd.f32 %v4932_v17, %v4858_v21  ;;  %v4938_v47 = vsel %vm103_vm0, %v4936_v18, 0.0 }
 0xdd4   :  { %4939 = vadd.xlane.f32.xlu1 %v4938_v47 }
 0xdd5   :  { %v4937_v22 = vadd.f32 %v4933_v5, %v6161_v49 }
 0xdd7   :  { %v4941_v23 = vsel %vm103_vm0, %v4937_v22, 0.0 }
 0xdd8   :  { %4942 = vadd.xlane.f32.xlu0 %v4941_v23 }
 0xe5d   :  { %v4940_v29 = vpop.xlane.xlu1 %4939 }
 0xe5e   :  { %v4944_v51 = vmul.f32 0.03125, %v4940_v29 }
 0xe60   :  { %v4946_v8 = vsub.f32 %v4936_v18, %v4944_v51 }
 0xe61   :  { %v4943_v30 = vpop.xlane.xlu0 %4942 }
 0xe62   :  { %v4945_v6 = vmul.f32 0.03125, %v4943_v30  ;;  %v4948_v31 = vmul.f32 %v4946_v8, %v4946_v8 }
 0xe64   :  { %v4947_v33 = vsub.f32 %v4937_v22, %v4945_v6  ;;  %v4950_v28 = vsel %vm103_vm0, %v4948_v31, 0.0 }
 0xe65   :  { %4951 = vadd.xlane.f32.xlu1 %v4950_v28 }
 0xe66   :  { %v4949_v13 = vmul.f32 %v4947_v33, %v4947_v33 }
 0xe68   :  { %v4953_v24 = vsel %vm103_vm0, %v4949_v13, 0.0 }
 0xe69   :  { %4954 = vadd.xlane.f32.xlu0 %v4953_v24 }
 0xeee   :  { %v4952_v46 = vpop.xlane.xlu1 %4951 }
 0xeef   :  { %v4956_v27 = vmul.f32 0.03125, %v4952_v46 }
 0xef1   :  { %v4958_v49 = vadd.f32 1e-05, %v4956_v27 }
 0xef2   :  { %v4955_v45 = vpop.xlane.xlu0 %4954 }
 0xef3   :  { %5479 = vrsqrt.f32 %v4958_v49  ;;  %v4957_v34 = vmul.f32 0.03125, %v4955_v45 }
 0xef5   :  { %v4959_v12 = vadd.f32 1e-05, %v4957_v34 }
 0xef7   :  { %5481 = vrsqrt.f32 %v4959_v12 }
 0xf00   :  { %v5480_v58 = vpop.eup %5479 }
 0xf01   :  { %v4962_v35 = vmul.f32 %v5480_v58, %v4946_v8 }
 0xf03   :  { %v4968_v39 = vmul.f32 %v4967_v36, %v4962_v35 }
 0xf04   :  { %v5482_v40 = vpop.eup %5481 }
 0xf05   :  { %v4963_v41 = vmul.f32 %v5482_v40, %v4947_v33  ;;  %v4974_v42 = vadd.f32 %v5071_v38, %v4968_v39 }
 0xf07   :  { %v4969_v43 = vmul.f32 %v4967_v36, %v4963_v41  ;;  %4976 = vst.msk [vmem:[#allocation11] sm:$0xff] %vm103_vm0, %v4974_v42 }
 0xf09   :  { %v4975_v37 = vadd.f32 %v5071_v38, %v4969_v43 }
 0xf0b   :  { %4977 = vst.msk [vmem:[#allocation11 + $0x8] sm:$0xff] %vm103_vm0, %v4975_v37 }
 0xf0c   :  { %5595 = shalt.err (!%p5592_p1)
}
 0xf0d   :  { %4989 = dma.vmem_to_hbm [thread:$0]  %s4984_s1, 256, %s6290_s5, [#allocation4], %s5614_s23, %s5614_s23, %s5615_s24  }
 0xf0e   :  { %5610 = dma.done.wait [#allocation4], 256  }
 0xf0f   :  { %5611 = vsyncadd [#allocation4], 4294967040 }
 0xf10   :  { %4993 = vsyncpa [#allocation3], 1 }
 0xf11   :  { %4994 = vsyncpa [#allocation6], 1 }
 0xf12   :  { %4995 = vsyncpa [#allocation9], 1 }
 0xf13   :  { %4996 = vsyncpa [#allocation4], 1 }

</bundles_post_ra>
